<compile_context>
chip_gen: v5e
topology: v5e:2x2
jax: 0.10.0
libtpu: 0.0.40
codegen_flags: <defaults>
</compile_context>

<pallas_src>
import jax
import jax.numpy as jnp
from jax.experimental import pallas as pl
from jax.experimental.pallas import tpu as pltpu


# ----------------------------------------------------------------------------
# Weight-norm reparameterization (torch.nn.utils.weight_norm, dim=0):
#   w[o] = g[o] * v[o] / ||v[o]||_2   (norm over (Cin, K) per output channel)
# Tiny per-filter reduction; done in jnp in the wrapper.
# ----------------------------------------------------------------------------
def weight_norm_weight(v, g):
    norm = jnp.sqrt(jnp.sum(v * v, axis=(1, 2), keepdims=True))
    return v * (g.reshape(-1, 1, 1) / norm)


# ----------------------------------------------------------------------------
# Fused causal dilated Conv1d (== Conv1d(padding) + Chomp1d) + bias + ReLU
# (+ optional residual add + final ReLU).
# ----------------------------------------------------------------------------
def _make_causal_conv_kernel(k_taps, dilation, relu_out, with_residual):
    def kernel(x_ref, w_ref, b_ref, *rest):
        if with_residual:
            res_ref, o_ref = rest
        else:
            (o_ref,) = rest
        out_l = o_ref.shape[-1]
        acc = jnp.zeros(o_ref.shape, jnp.float32)
        # Static taps -> static slices of the left-padded input; one MXU matmul
        # (Cout, Cin) @ (Cin, L) per tap, accumulated in f32.
        for k in range(k_taps):
            x_k = x_ref[:, k * dilation: k * dilation + out_l]
            acc = acc + jnp.dot(w_ref[k], x_k, preferred_element_type=jnp.float32)
        acc = acc + b_ref[...]                       # (Cout, 1) broadcast
        if relu_out:
            acc = jnp.maximum(acc, 0.0)
        if with_residual:
            acc = jnp.maximum(acc + res_ref[...].astype(jnp.float32), 0.0)
        o_ref[...] = acc.astype(o_ref.dtype)
    return kernel


def causal_conv1d(x, w, b, dilation, *, relu=True, residual=None):
    """Fused [Conv1d(pad=(K-1)*d) -> Chomp1d -> (+bias) -> ReLU (-> +res -> ReLU)].

    x: (B, Cin, L) f32;  w: (Cout, Cin, K);  b: (Cout,);  residual: (B, Cout, L).
    Returns (B, Cout, L).
    """
    batch, c_in, seq = x.shape
    c_out, _, k_taps = w.shape
    pad = (k_taps - 1) * dilation
    # Left pad only == symmetric conv padding followed by Chomp1d(pad): the
    # chomped tail is never computed nor moved through HBM.
    x_pad = jnp.pad(x, ((0, 0), (0, 0), (pad, 0)))
    w_k = jnp.transpose(w, (2, 0, 1))                # (K, Cout, Cin)
    b_col = b.reshape(c_out, 1)

    in_specs = [
        pl.BlockSpec((None, c_in, seq + pad), lambda bi: (bi, 0, 0)),
        pl.BlockSpec((k_taps, c_out, c_in), lambda bi: (0, 0, 0)),
        pl.BlockSpec((c_out, 1), lambda bi: (0, 0)),
    ]
    args = [x_pad, w_k, b_col]
    if residual is not None:
        in_specs.append(pl.BlockSpec((None, c_out, seq), lambda bi: (bi, 0, 0)))
        args.append(residual)

    bytes_accessed = 4 * (x_pad.size + w_k.size + b_col.size + batch * c_out * seq
                          + (residual.size if residual is not None else 0))
    cost = pl.CostEstimate(flops=2 * batch * c_out * c_in * k_taps * seq,
                           transcendentals=0, bytes_accessed=bytes_accessed)

    return pl.pallas_call(
        _make_causal_conv_kernel(k_taps, dilation, relu, residual is not None),
        out_shape=jax.ShapeDtypeStruct((batch, c_out, seq), x.dtype),
        grid=(batch,),
        in_specs=in_specs,
        out_specs=pl.BlockSpec((None, c_out, seq), lambda bi: (bi, 0, 0)),
        compiler_params=pltpu.CompilerParams(dimension_semantics=("parallel",)),
        cost_estimate=cost,
    )(*args)


# ----------------------------------------------------------------------------
# Linear head: y = x @ w + b, output-feature axis tiled.
# ----------------------------------------------------------------------------
def _linear_kernel(x_ref, w_ref, b_ref, o_ref):
    acc = jnp.dot(x_ref[...], w_ref[...], preferred_element_type=jnp.float32)
    o_ref[...] = (acc + b_ref[...]).astype(o_ref.dtype)


def linear(x, w, b, *, max_n_tile=512):
    batch, h = x.shape
    n = w.shape[1]
    tn = n if n <= max_n_tile else (max_n_tile // 128) * 128  # full-extent or 128-multiple
    return pl.pallas_call(
        _linear_kernel,
        out_shape=jax.ShapeDtypeStruct((batch, n), x.dtype),
        grid=(pl.cdiv(n, tn),),
        in_specs=[pl.BlockSpec((batch, h), lambda j: (0, 0)),
                  pl.BlockSpec((h, tn), lambda j: (0, j)),
                  pl.BlockSpec((1, tn), lambda j: (0, j))],
        out_specs=pl.BlockSpec((batch, tn), lambda j: (0, j)),
        compiler_params=pltpu.CompilerParams(dimension_semantics=("parallel",)),
    )(x, w, b.reshape(1, n))


# ----------------------------------------------------------------------------
# Full RNN.forward (eval mode): embeddings -> 2-level TCN -> last step -> heads.
# ----------------------------------------------------------------------------
def rnn_forward(params, inputs, directions, mask=None):
    del mask  # unused by the reference forward as well
    # TODO(synk): embedding lookup is a data-dependent HBM gather; left to XLA.
    link_embs = jnp.take(params["link_emb"], inputs, axis=0)
    dir_embs = jnp.take(params["dir_emb"], directions, axis=0)
    x = jnp.transpose(jnp.concatenate([link_embs, dir_embs], axis=-1), (0, 2, 1))

    # ----- TemporalBlock 1 (dilation 1, 1x1-conv downsample residual) -----
    w11 = weight_norm_weight(params["tb1_v1"], params["tb1_g1"])
    w12 = weight_norm_weight(params["tb1_v2"], params["tb1_g2"])
    h = causal_conv1d(x, w11, params["tb1_b1"], 1, relu=True)
    # TODO(synk): nn.Dropout is identity in eval mode; training-mode masking not implemented.
    res = causal_conv1d(x, params["tb1_wd"], params["tb1_bd"], 1, relu=False)
    y1 = causal_conv1d(h, w12, params["tb1_b2"], 1, relu=True, residual=res)

    # ----- TemporalBlock 2 (dilation 2, identity residual) -----
    w21 = weight_norm_weight(params["tb2_v1"], params["tb2_g1"])
    w22 = weight_norm_weight(params["tb2_v2"], params["tb2_g2"])
    h2 = causal_conv1d(y1, w21, params["tb2_b1"], 2, relu=True)
    y2 = causal_conv1d(h2, w22, params["tb2_b2"], 2, relu=True, residual=y1)

    out = y2[:, :, -1]                               # last time step, (B, hidden)
    pred = linear(out, params["w_link"], params["b_link"])
    pred_d = linear(out, params["w_dir"], params["b_dir"])
    return pred, pred_d


# ----------------------------------------------------------------------------
# Pure-JAX reference (uses lax.conv_general_dilated + explicit chomp slice).
# ----------------------------------------------------------------------------
def _ref_conv_chomp(x, w, b, dilation):
    k = w.shape[-1]
    pad = (k - 1) * dilation
    y = jax.lax.conv_general_dilated(
        x, w, window_strides=(1,), padding=[(pad, pad)], rhs_dilation=(dilation,),
        dimension_numbers=("NCH", "OIH", "NCH"))
    return (y + b[None, :, None])[:, :, : x.shape[2]]


def ref_forward(params, inputs, directions):
    link_embs = jnp.take(params["link_emb"], inputs, axis=0)
    dir_embs = jnp.take(params["dir_emb"], directions, axis=0)
    x = jnp.transpose(jnp.concatenate([link_embs, dir_embs], axis=-1), (0, 2, 1))
    w11 = weight_norm_weight(params["tb1_v1"], params["tb1_g1"])
    w12 = weight_norm_weight(params["tb1_v2"], params["tb1_g2"])
    h = jax.nn.relu(_ref_conv_chomp(x, w11, params["tb1_b1"], 1))
    h = jax.nn.relu(_ref_conv_chomp(h, w12, params["tb1_b2"], 1))
    res = _ref_conv_chomp(x, params["tb1_wd"], params["tb1_bd"], 1)
    y1 = jax.nn.relu(h + res)
    w21 = weight_norm_weight(params["tb2_v1"], params["tb2_g1"])
    w22 = weight_norm_weight(params["tb2_v2"], params["tb2_g2"])
    h2 = jax.nn.relu(_ref_conv_chomp(y1, w21, params["tb2_b1"], 2))
    h2 = jax.nn.relu(_ref_conv_chomp(h2, w22, params["tb2_b2"], 2))
    y2 = jax.nn.relu(h2 + y1)
    out = y2[:, :, -1]
    return out @ params["w_link"] + params["b_link"], out @ params["w_dir"] + params["b_dir"]


if __name__ == "__main__":
    # Small deterministic shapes consistent with the module's forward.
    batch, seq_len = 2, 16
    num_edges, edge_dim = 20, 8
    num_dirs, dir_dim = 4, 4
    hidden, pre_len, ksize = 32, 3, 3
    c0 = edge_dim + dir_dim

    key = jax.random.PRNGKey(0)
    ks = list(jax.random.split(key, 24))

    def nrm(k, shape, scale=0.01):
        return scale * jax.random.normal(k, shape, jnp.float32)

    params = {
        "link_emb": nrm(ks[0], (num_edges + 1, edge_dim), 1.0).at[0].set(0.0),
        "dir_emb": nrm(ks[1], (num_dirs + 1, dir_dim), 1.0).at[0].set(0.0),
        "tb1_v1": nrm(ks[2], (hidden, c0, ksize)),
        "tb1_g1": 1.0 + 0.1 * jax.random.normal(ks[3], (hidden,), jnp.float32),
        "tb1_b1": nrm(ks[4], (hidden,), 0.1),
        "tb1_v2": nrm(ks[5], (hidden, hidden, ksize)),
        "tb1_g2": 1.0 + 0.1 * jax.random.normal(ks[6], (hidden,), jnp.float32),
        "tb1_b2": nrm(ks[7], (hidden,), 0.1),
        "tb1_wd": nrm(ks[8], (hidden, c0, 1)),
        "tb1_bd": nrm(ks[9], (hidden,), 0.1),
        "tb2_v1": nrm(ks[10], (hidden, hidden, ksize)),
        "tb2_g1": 1.0 + 0.1 * jax.random.normal(ks[11], (hidden,), jnp.float32),
        "tb2_b1": nrm(ks[12], (hidden,), 0.1),
        "tb2_v2": nrm(ks[13], (hidden, hidden, ksize)),
        "tb2_g2": 1.0 + 0.1 * jax.random.normal(ks[14], (hidden,), jnp.float32),
        "tb2_b2": nrm(ks[15], (hidden,), 0.1),
        "w_link": nrm(ks[16], (hidden, num_edges * pre_len), 0.1),
        "b_link": nrm(ks[17], (num_edges * pre_len,), 0.1),
        "w_dir": nrm(ks[18], (hidden, num_dirs * pre_len), 0.1),
        "b_dir": nrm(ks[19], (num_dirs * pre_len,), 0.1),
    }
    inputs = jax.random.randint(ks[20], (batch, seq_len), 0, num_edges + 1)
    directions = jax.random.randint(ks[21], (batch, seq_len), 0, num_dirs + 1)

    fwd = jax.jit(rnn_forward)
    pred, pred_d = jax.block_until_ready(fwd(params, inputs, directions))

    ref_pred, ref_pred_d = ref_forward(params, inputs, directions)
    assert pred.shape == (batch, num_edges * pre_len)
    assert pred_d.shape == (batch, num_dirs * pre_len)
    assert jnp.allclose(pred, ref_pred, atol=1e-4, rtol=1e-4)
    assert jnp.allclose(pred_d, ref_pred_d, atol=1e-4, rtol=1e-4)
    print("KERNEL_OK")
</pallas_src>

<mosaic_0001>
module attributes {stable_mosaic.version = 11 : i64} {
  func.func @kernel(%arg0: i32, %arg1: memref<1x12x18xf32, #tpu.memory_space<vmem>>, %arg2: memref<3x32x12xf32, #tpu.memory_space<vmem>>, %arg3: memref<32x1xf32, #tpu.memory_space<vmem>>, %arg4: memref<1x32x16xf32, #tpu.memory_space<vmem>>) attributes {dimension_semantics = [#tpu.dimension_semantics<parallel>], iteration_bounds = array<i64: 2>, scalar_prefetch = 0 : i64, scratch_operands = 0 : i64, tpu.core_type = #tpu.core_type<tc>, window_params = [{transform_indices = @transform_0, window_bounds = array<i64: 1, 12, 18>}, {pipeline_mode = #tpu.pipeline_mode<synchronous>, transform_indices = @transform_1, window_bounds = array<i64: 3, 32, 12>}, {pipeline_mode = #tpu.pipeline_mode<synchronous>, transform_indices = @transform_2, window_bounds = array<i64: 32, 1>}, {transform_indices = @transform_3, window_bounds = array<i64: 1, 32, 16>}]} {
    %cst = arith.constant 0.000000e+00 : f32
    %0 = vector.broadcast %cst : f32 to vector<32x16xf32>
    %c0 = arith.constant 0 : index
    %c0_0 = arith.constant 0 : index
    %c0_1 = arith.constant 0 : index
    %1 = vector.load %arg1[%c0, %c0_0, %c0_1] : memref<1x12x18xf32, #tpu.memory_space<vmem>>, vector<1x12x16xf32>
    %2 = vector.shape_cast %1 : vector<1x12x16xf32> to vector<12x16xf32>
    %c0_2 = arith.constant 0 : index
    %c0_3 = arith.constant 0 : index
    %c0_4 = arith.constant 0 : index
    %3 = vector.load %arg2[%c0_2, %c0_3, %c0_4] : memref<3x32x12xf32, #tpu.memory_space<vmem>>, vector<1x32x12xf32>
    %4 = vector.shape_cast %3 : vector<1x32x12xf32> to vector<32x12xf32>
    %cst_5 = arith.constant dense<0.000000e+00> : vector<32x16xf32>
    %5 = tpu.matmul %4, %2, %cst_5 {dimension_numbers = #tpu.dot_dimension_numbers<[1], [0], [0], [1], [0, 0, 1, 1], [], []>} : vector<32x12xf32>, vector<12x16xf32>, vector<32x16xf32> -> vector<32x16xf32>
    %6 = arith.addf %0, %5 : vector<32x16xf32>
    %c0_6 = arith.constant 0 : index
    %c0_7 = arith.constant 0 : index
    %c1 = arith.constant 1 : index
    %7 = vector.load %arg1[%c0_6, %c0_7, %c1] : memref<1x12x18xf32, #tpu.memory_space<vmem>>, vector<1x12x16xf32>
    %8 = vector.shape_cast %7 : vector<1x12x16xf32> to vector<12x16xf32>
    %c1_8 = arith.constant 1 : index
    %c0_9 = arith.constant 0 : index
    %c0_10 = arith.constant 0 : index
    %9 = vector.load %arg2[%c1_8, %c0_9, %c0_10] : memref<3x32x12xf32, #tpu.memory_space<vmem>>, vector<1x32x12xf32>
    %10 = vector.shape_cast %9 : vector<1x32x12xf32> to vector<32x12xf32>
    %cst_11 = arith.constant dense<0.000000e+00> : vector<32x16xf32>
    %11 = tpu.matmul %10, %8, %cst_11 {dimension_numbers = #tpu.dot_dimension_numbers<[1], [0], [0], [1], [0, 0, 1, 1], [], []>} : vector<32x12xf32>, vector<12x16xf32>, vector<32x16xf32> -> vector<32x16xf32>
    %12 = arith.addf %6, %11 : vector<32x16xf32>
    %c0_12 = arith.constant 0 : index
    %c0_13 = arith.constant 0 : index
    %c2 = arith.constant 2 : index
    %13 = vector.load %arg1[%c0_12, %c0_13, %c2] : memref<1x12x18xf32, #tpu.memory_space<vmem>>, vector<1x12x16xf32>
    %14 = vector.shape_cast %13 : vector<1x12x16xf32> to vector<12x16xf32>
    %c2_14 = arith.constant 2 : index
    %c0_15 = arith.constant 0 : index
    %c0_16 = arith.constant 0 : index
    %15 = vector.load %arg2[%c2_14, %c0_15, %c0_16] : memref<3x32x12xf32, #tpu.memory_space<vmem>>, vector<1x32x12xf32>
    %16 = vector.shape_cast %15 : vector<1x32x12xf32> to vector<32x12xf32>
    %cst_17 = arith.constant dense<0.000000e+00> : vector<32x16xf32>
    %17 = tpu.matmul %16, %14, %cst_17 {dimension_numbers = #tpu.dot_dimension_numbers<[1], [0], [0], [1], [0, 0, 1, 1], [], []>} : vector<32x12xf32>, vector<12x16xf32>, vector<32x16xf32> -> vector<32x16xf32>
    %18 = arith.addf %12, %17 : vector<32x16xf32>
    %c0_18 = arith.constant 0 : index
    %c0_19 = arith.constant 0 : index
    %19 = vector.load %arg3[%c0_18, %c0_19] : memref<32x1xf32, #tpu.memory_space<vmem>>, vector<32x1xf32>
    %20 = vector.broadcast %19 : vector<32x1xf32> to vector<32x16xf32>
    %21 = arith.addf %18, %20 : vector<32x16xf32>
    %cst_20 = arith.constant 0.000000e+00 : f32
    %22 = vector.broadcast %cst_20 : f32 to vector<32x16xf32>
    %23 = arith.maximumf %21, %22 : vector<32x16xf32>
    %c0_21 = arith.constant 0 : index
    %c0_22 = arith.constant 0 : index
    %c0_23 = arith.constant 0 : index
    %24 = vector.load %arg4[%c0_21, %c0_22, %c0_23] : memref<1x32x16xf32, #tpu.memory_space<vmem>>, vector<1x32x16xf32>
    %25 = vector.shape_cast %24 : vector<1x32x16xf32> to vector<32x16xf32>
    %26 = vector.shape_cast %23 : vector<32x16xf32> to vector<1x32x16xf32>
    tpu.vector_store %arg4[%c0_21, %c0_22, %c0_23], %26 {strides = array<i32>} : memref<1x32x16xf32, #tpu.memory_space<vmem>>, vector<1x32x16xf32>,
    return
  }
  func.func @transform_0(%arg0: i32) -> (i32, i32, i32) {
    %c0_i32 = arith.constant 0 : i32
    %c0_i32_0 = arith.constant 0 : i32
    %c0_i32_1 = arith.constant 0 : i32
    return %arg0, %c0_i32, %c0_i32_0 : i32, i32, i32
  }
  func.func @transform_1(%arg0: i32) -> (i32, i32, i32) {
    %c0_i32 = arith.constant 0 : i32
    %c0_i32_0 = arith.constant 0 : i32
    %c0_i32_1 = arith.constant 0 : i32
    %c0_i32_2 = arith.constant 0 : i32
    return %c0_i32, %c0_i32_0, %c0_i32_1 : i32, i32, i32
  }
  func.func @transform_2(%arg0: i32) -> (i32, i32) {
    %c0_i32 = arith.constant 0 : i32
    %c0_i32_0 = arith.constant 0 : i32
    %c0_i32_1 = arith.constant 0 : i32
    return %c0_i32, %c0_i32_0 : i32, i32
  }
  func.func @transform_3(%arg0: i32) -> (i32, i32, i32) {
    %c0_i32 = arith.constant 0 : i32
    %c0_i32_0 = arith.constant 0 : i32
    %c0_i32_1 = arith.constant 0 : i32
    return %arg0, %c0_i32, %c0_i32_0 : i32, i32, i32
  }
}

module attributes {stable_mosaic.version = 11 : i64} {
  func.func @kernel(%arg0: i32, %arg1: memref<1x12x16xf32, #tpu.memory_space<vmem>>, %arg2: memref<1x32x12xf32, #tpu.memory_space<vmem>>, %arg3: memref<32x1xf32, #tpu.memory_space<vmem>>, %arg4: memref<1x32x16xf32, #tpu.memory_space<vmem>>) attributes {dimension_semantics = [#tpu.dimension_semantics<parallel>], iteration_bounds = array<i64: 2>, scalar_prefetch = 0 : i64, scratch_operands = 0 : i64, tpu.core_type = #tpu.core_type<tc>, window_params = [{transform_indices = @transform_0, window_bounds = array<i64: 1, 12, 16>}, {pipeline_mode = #tpu.pipeline_mode<synchronous>, transform_indices = @transform_1, window_bounds = array<i64: 1, 32, 12>}, {pipeline_mode = #tpu.pipeline_mode<synchronous>, transform_indices = @transform_2, window_bounds = array<i64: 32, 1>}, {transform_indices = @transform_3, window_bounds = array<i64: 1, 32, 16>}]} {
    %cst = arith.constant 0.000000e+00 : f32
    %0 = vector.broadcast %cst : f32 to vector<32x16xf32>
    %c0 = arith.constant 0 : index
    %c0_0 = arith.constant 0 : index
    %c0_1 = arith.constant 0 : index
    %1 = vector.load %arg1[%c0, %c0_0, %c0_1] : memref<1x12x16xf32, #tpu.memory_space<vmem>>, vector<1x12x16xf32>
    %2 = vector.shape_cast %1 : vector<1x12x16xf32> to vector<12x16xf32>
    %c0_2 = arith.constant 0 : index
    %c0_3 = arith.constant 0 : index
    %c0_4 = arith.constant 0 : index
    %3 = vector.load %arg2[%c0_2, %c0_3, %c0_4] : memref<1x32x12xf32, #tpu.memory_space<vmem>>, vector<1x32x12xf32>
    %4 = vector.shape_cast %3 : vector<1x32x12xf32> to vector<32x12xf32>
    %cst_5 = arith.constant dense<0.000000e+00> : vector<32x16xf32>
    %5 = tpu.matmul %4, %2, %cst_5 {dimension_numbers = #tpu.dot_dimension_numbers<[1], [0], [0], [1], [0, 0, 1, 1], [], []>} : vector<32x12xf32>, vector<12x16xf32>, vector<32x16xf32> -> vector<32x16xf32>
    %6 = arith.addf %0, %5 : vector<32x16xf32>
    %c0_6 = arith.constant 0 : index
    %c0_7 = arith.constant 0 : index
    %7 = vector.load %arg3[%c0_6, %c0_7] : memref<32x1xf32, #tpu.memory_space<vmem>>, vector<32x1xf32>
    %8 = vector.broadcast %7 : vector<32x1xf32> to vector<32x16xf32>
    %9 = arith.addf %6, %8 : vector<32x16xf32>
    %c0_8 = arith.constant 0 : index
    %c0_9 = arith.constant 0 : index
    %c0_10 = arith.constant 0 : index
    %10 = vector.load %arg4[%c0_8, %c0_9, %c0_10] : memref<1x32x16xf32, #tpu.memory_space<vmem>>, vector<1x32x16xf32>
    %11 = vector.shape_cast %10 : vector<1x32x16xf32> to vector<32x16xf32>
    %12 = vector.shape_cast %9 : vector<32x16xf32> to vector<1x32x16xf32>
    tpu.vector_store %arg4[%c0_8, %c0_9, %c0_10], %12 {strides = array<i32>} : memref<1x32x16xf32, #tpu.memory_space<vmem>>, vector<1x32x16xf32>,
    return
  }
  func.func @transform_0(%arg0: i32) -> (i32, i32, i32) {
    %c0_i32 = arith.constant 0 : i32
    %c0_i32_0 = arith.constant 0 : i32
    %c0_i32_1 = arith.constant 0 : i32
    return %arg0, %c0_i32, %c0_i32_0 : i32, i32, i32
  }
  func.func @transform_1(%arg0: i32) -> (i32, i32, i32) {
    %c0_i32 = arith.constant 0 : i32
    %c0_i32_0 = arith.constant 0 : i32
    %c0_i32_1 = arith.constant 0 : i32
    %c0_i32_2 = arith.constant 0 : i32
    return %c0_i32, %c0_i32_0, %c0_i32_1 : i32, i32, i32
  }
  func.func @transform_2(%arg0: i32) -> (i32, i32) {
    %c0_i32 = arith.constant 0 : i32
    %c0_i32_0 = arith.constant 0 : i32
    %c0_i32_1 = arith.constant 0 : i32
    return %c0_i32, %c0_i32_0 : i32, i32
  }
  func.func @transform_3(%arg0: i32) -> (i32, i32, i32) {
    %c0_i32 = arith.constant 0 : i32
    %c0_i32_0 = arith.constant 0 : i32
    %c0_i32_1 = arith.constant 0 : i32
    return %arg0, %c0_i32, %c0_i32_0 : i32, i32, i32
  }
}

module attributes {stable_mosaic.version = 11 : i64} {
  func.func @kernel(%arg0: i32, %arg1: memref<1x32x18xf32, #tpu.memory_space<vmem>>, %arg2: memref<3x32x32xf32, #tpu.memory_space<vmem>>, %arg3: memref<32x1xf32, #tpu.memory_space<vmem>>, %arg4: memref<1x32x16xf32, #tpu.memory_space<vmem>>, %arg5: memref<1x32x16xf32, #tpu.memory_space<vmem>>) attributes {dimension_semantics = [#tpu.dimension_semantics<parallel>], iteration_bounds = array<i64: 2>, scalar_prefetch = 0 : i64, scratch_operands = 0 : i64, tpu.core_type = #tpu.core_type<tc>, window_params = [{transform_indices = @transform_0, window_bounds = array<i64: 1, 32, 18>}, {pipeline_mode = #tpu.pipeline_mode<synchronous>, transform_indices = @transform_1, window_bounds = array<i64: 3, 32, 32>}, {pipeline_mode = #tpu.pipeline_mode<synchronous>, transform_indices = @transform_2, window_bounds = array<i64: 32, 1>}, {transform_indices = @transform_3, window_bounds = array<i64: 1, 32, 16>}, {transform_indices = @transform_4, window_bounds = array<i64: 1, 32, 16>}]} {
    %cst = arith.constant 0.000000e+00 : f32
    %0 = vector.broadcast %cst : f32 to vector<32x16xf32>
    %c0 = arith.constant 0 : index
    %c0_0 = arith.constant 0 : index
    %c0_1 = arith.constant 0 : index
    %1 = vector.load %arg1[%c0, %c0_0, %c0_1] : memref<1x32x18xf32, #tpu.memory_space<vmem>>, vector<1x32x16xf32>
    %2 = vector.shape_cast %1 : vector<1x32x16xf32> to vector<32x16xf32>
    %c0_2 = arith.constant 0 : index
    %c0_3 = arith.constant 0 : index
    %c0_4 = arith.constant 0 : index
    %3 = vector.load %arg2[%c0_2, %c0_3, %c0_4] : memref<3x32x32xf32, #tpu.memory_space<vmem>>, vector<1x32x32xf32>
    %4 = vector.shape_cast %3 : vector<1x32x32xf32> to vector<32x32xf32>
    %cst_5 = arith.constant dense<0.000000e+00> : vector<32x16xf32>
    %5 = tpu.matmul %4, %2, %cst_5 {dimension_numbers = #tpu.dot_dimension_numbers<[1], [0], [0], [1], [0, 0, 1, 1], [], []>} : vector<32x32xf32>, vector<32x16xf32>, vector<32x16xf32> -> vector<32x16xf32>
    %6 = arith.addf %0, %5 : vector<32x16xf32>
    %c0_6 = arith.constant 0 : index
    %c0_7 = arith.constant 0 : index
    %c1 = arith.constant 1 : index
    %7 = vector.load %arg1[%c0_6, %c0_7, %c1] : memref<1x32x18xf32, #tpu.memory_space<vmem>>, vector<1x32x16xf32>
    %8 = vector.shape_cast %7 : vector<1x32x16xf32> to vector<32x16xf32>
    %c1_8 = arith.constant 1 : index
    %c0_9 = arith.constant 0 : index
    %c0_10 = arith.constant 0 : index
    %9 = vector.load %arg2[%c1_8, %c0_9, %c0_10] : memref<3x32x32xf32, #tpu.memory_space<vmem>>, vector<1x32x32xf32>
    %10 = vector.shape_cast %9 : vector<1x32x32xf32> to vector<32x32xf32>
    %cst_11 = arith.constant dense<0.000000e+00> : vector<32x16xf32>
    %11 = tpu.matmul %10, %8, %cst_11 {dimension_numbers = #tpu.dot_dimension_numbers<[1], [0], [0], [1], [0, 0, 1, 1], [], []>} : vector<32x32xf32>, vector<32x16xf32>, vector<32x16xf32> -> vector<32x16xf32>
    %12 = arith.addf %6, %11 : vector<32x16xf32>
    %c0_12 = arith.constant 0 : index
    %c0_13 = arith.constant 0 : index
    %c2 = arith.constant 2 : index
    %13 = vector.load %arg1[%c0_12, %c0_13, %c2] : memref<1x32x18xf32, #tpu.memory_space<vmem>>, vector<1x32x16xf32>
    %14 = vector.shape_cast %13 : vector<1x32x16xf32> to vector<32x16xf32>
    %c2_14 = arith.constant 2 : index
    %c0_15 = arith.constant 0 : index
    %c0_16 = arith.constant 0 : index
    %15 = vector.load %arg2[%c2_14, %c0_15, %c0_16] : memref<3x32x32xf32, #tpu.memory_space<vmem>>, vector<1x32x32xf32>
    %16 = vector.shape_cast %15 : vector<1x32x32xf32> to vector<32x32xf32>
    %cst_17 = arith.constant dense<0.000000e+00> : vector<32x16xf32>
    %17 = tpu.matmul %16, %14, %cst_17 {dimension_numbers = #tpu.dot_dimension_numbers<[1], [0], [0], [1], [0, 0, 1, 1], [], []>} : vector<32x32xf32>, vector<32x16xf32>, vector<32x16xf32> -> vector<32x16xf32>
    %18 = arith.addf %12, %17 : vector<32x16xf32>
    %c0_18 = arith.constant 0 : index
    %c0_19 = arith.constant 0 : index
    %19 = vector.load %arg3[%c0_18, %c0_19] : memref<32x1xf32, #tpu.memory_space<vmem>>, vector<32x1xf32>
    %20 = vector.broadcast %19 : vector<32x1xf32> to vector<32x16xf32>
    %21 = arith.addf %18, %20 : vector<32x16xf32>
    %cst_20 = arith.constant 0.000000e+00 : f32
    %22 = vector.broadcast %cst_20 : f32 to vector<32x16xf32>
    %23 = arith.maximumf %21, %22 : vector<32x16xf32>
    %c0_21 = arith.constant 0 : index
    %c0_22 = arith.constant 0 : index
    %c0_23 = arith.constant 0 : index
    %24 = vector.load %arg4[%c0_21, %c0_22, %c0_23] : memref<1x32x16xf32, #tpu.memory_space<vmem>>, vector<1x32x16xf32>
    %25 = vector.shape_cast %24 : vector<1x32x16xf32> to vector<32x16xf32>
    %26 = arith.addf %23, %25 : vector<32x16xf32>
    %cst_24 = arith.constant 0.000000e+00 : f32
    %27 = vector.broadcast %cst_24 : f32 to vector<32x16xf32>
    %28 = arith.maximumf %26, %27 : vector<32x16xf32>
    %c0_25 = arith.constant 0 : index
    %c0_26 = arith.constant 0 : index
    %c0_27 = arith.constant 0 : index
    %29 = vector.load %arg5[%c0_25, %c0_26, %c0_27] : memref<1x32x16xf32, #tpu.memory_space<vmem>>, vector<1x32x16xf32>
    %30 = vector.shape_cast %29 : vector<1x32x16xf32> to vector<32x16xf32>
    %31 = vector.shape_cast %28 : vector<32x16xf32> to vector<1x32x16xf32>
    tpu.vector_store %arg5[%c0_25, %c0_26, %c0_27], %31 {strides = array<i32>} : memref<1x32x16xf32, #tpu.memory_space<vmem>>, vector<1x32x16xf32>,
    return
  }
  func.func @transform_0(%arg0: i32) -> (i32, i32, i32) {
    %c0_i32 = arith.constant 0 : i32
    %c0_i32_0 = arith.constant 0 : i32
    %c0_i32_1 = arith.constant 0 : i32
    return %arg0, %c0_i32, %c0_i32_0 : i32, i32, i32
  }
  func.func @transform_1(%arg0: i32) -> (i32, i32, i32) {
    %c0_i32 = arith.constant 0 : i32
    %c0_i32_0 = arith.constant 0 : i32
    %c0_i32_1 = arith.constant 0 : i32
    %c0_i32_2 = arith.constant 0 : i32
    return %c0_i32, %c0_i32_0, %c0_i32_1 : i32, i32, i32
  }
  func.func @transform_2(%arg0: i32) -> (i32, i32) {
    %c0_i32 = arith.constant 0 : i32
    %c0_i32_0 = arith.constant 0 : i32
    %c0_i32_1 = arith.constant 0 : i32
    return %c0_i32, %c0_i32_0 : i32, i32
  }
  func.func @transform_3(%arg0: i32) -> (i32, i32, i32) {
    %c0_i32 = arith.constant 0 : i32
    %c0_i32_0 = arith.constant 0 : i32
    %c0_i32_1 = arith.constant 0 : i32
    return %arg0, %c0_i32, %c0_i32_0 : i32, i32, i32
  }
  func.func @transform_4(%arg0: i32) -> (i32, i32, i32) {
    %c0_i32 = arith.constant 0 : i32
    %c0_i32_0 = arith.constant 0 : i32
    %c0_i32_1 = arith.constant 0 : i32
    return %arg0, %c0_i32, %c0_i32_0 : i32, i32, i32
  }
}

module attributes {stable_mosaic.version = 11 : i64} {
  func.func @kernel(%arg0: i32, %arg1: memref<1x32x20xf32, #tpu.memory_space<vmem>>, %arg2: memref<3x32x32xf32, #tpu.memory_space<vmem>>, %arg3: memref<32x1xf32, #tpu.memory_space<vmem>>, %arg4: memref<1x32x16xf32, #tpu.memory_space<vmem>>) attributes {dimension_semantics = [#tpu.dimension_semantics<parallel>], iteration_bounds = array<i64: 2>, scalar_prefetch = 0 : i64, scratch_operands = 0 : i64, tpu.core_type = #tpu.core_type<tc>, window_params = [{transform_indices = @transform_0, window_bounds = array<i64: 1, 32, 20>}, {pipeline_mode = #tpu.pipeline_mode<synchronous>, transform_indices = @transform_1, window_bounds = array<i64: 3, 32, 32>}, {pipeline_mode = #tpu.pipeline_mode<synchronous>, transform_indices = @transform_2, window_bounds = array<i64: 32, 1>}, {transform_indices = @transform_3, window_bounds = array<i64: 1, 32, 16>}]} {
    %cst = arith.constant 0.000000e+00 : f32
    %0 = vector.broadcast %cst : f32 to vector<32x16xf32>
    %c0 = arith.constant 0 : index
    %c0_0 = arith.constant 0 : index
    %c0_1 = arith.constant 0 : index
    %1 = vector.load %arg1[%c0, %c0_0, %c0_1] : memref<1x32x20xf32, #tpu.memory_space<vmem>>, vector<1x32x16xf32>
    %2 = vector.shape_cast %1 : vector<1x32x16xf32> to vector<32x16xf32>
    %c0_2 = arith.constant 0 : index
    %c0_3 = arith.constant 0 : index
    %c0_4 = arith.constant 0 : index
    %3 = vector.load %arg2[%c0_2, %c0_3, %c0_4] : memref<3x32x32xf32, #tpu.memory_space<vmem>>, vector<1x32x32xf32>
    %4 = vector.shape_cast %3 : vector<1x32x32xf32> to vector<32x32xf32>
    %cst_5 = arith.constant dense<0.000000e+00> : vector<32x16xf32>
    %5 = tpu.matmul %4, %2, %cst_5 {dimension_numbers = #tpu.dot_dimension_numbers<[1], [0], [0], [1], [0, 0, 1, 1], [], []>} : vector<32x32xf32>, vector<32x16xf32>, vector<32x16xf32> -> vector<32x16xf32>
    %6 = arith.addf %0, %5 : vector<32x16xf32>
    %c0_6 = arith.constant 0 : index
    %c0_7 = arith.constant 0 : index
    %c2 = arith.constant 2 : index
    %7 = vector.load %arg1[%c0_6, %c0_7, %c2] : memref<1x32x20xf32, #tpu.memory_space<vmem>>, vector<1x32x16xf32>
    %8 = vector.shape_cast %7 : vector<1x32x16xf32> to vector<32x16xf32>
    %c1 = arith.constant 1 : index
    %c0_8 = arith.constant 0 : index
    %c0_9 = arith.constant 0 : index
    %9 = vector.load %arg2[%c1, %c0_8, %c0_9] : memref<3x32x32xf32, #tpu.memory_space<vmem>>, vector<1x32x32xf32>
    %10 = vector.shape_cast %9 : vector<1x32x32xf32> to vector<32x32xf32>
    %cst_10 = arith.constant dense<0.000000e+00> : vector<32x16xf32>
    %11 = tpu.matmul %10, %8, %cst_10 {dimension_numbers = #tpu.dot_dimension_numbers<[1], [0], [0], [1], [0, 0, 1, 1], [], []>} : vector<32x32xf32>, vector<32x16xf32>, vector<32x16xf32> -> vector<32x16xf32>
    %12 = arith.addf %6, %11 : vector<32x16xf32>
    %c0_11 = arith.constant 0 : index
    %c0_12 = arith.constant 0 : index
    %c4 = arith.constant 4 : index
    %13 = vector.load %arg1[%c0_11, %c0_12, %c4] : memref<1x32x20xf32, #tpu.memory_space<vmem>>, vector<1x32x16xf32>
    %14 = vector.shape_cast %13 : vector<1x32x16xf32> to vector<32x16xf32>
    %c2_13 = arith.constant 2 : index
    %c0_14 = arith.constant 0 : index
    %c0_15 = arith.constant 0 : index
    %15 = vector.load %arg2[%c2_13, %c0_14, %c0_15] : memref<3x32x32xf32, #tpu.memory_space<vmem>>, vector<1x32x32xf32>
    %16 = vector.shape_cast %15 : vector<1x32x32xf32> to vector<32x32xf32>
    %cst_16 = arith.constant dense<0.000000e+00> : vector<32x16xf32>
    %17 = tpu.matmul %16, %14, %cst_16 {dimension_numbers = #tpu.dot_dimension_numbers<[1], [0], [0], [1], [0, 0, 1, 1], [], []>} : vector<32x32xf32>, vector<32x16xf32>, vector<32x16xf32> -> vector<32x16xf32>
    %18 = arith.addf %12, %17 : vector<32x16xf32>
    %c0_17 = arith.constant 0 : index
    %c0_18 = arith.constant 0 : index
    %19 = vector.load %arg3[%c0_17, %c0_18] : memref<32x1xf32, #tpu.memory_space<vmem>>, vector<32x1xf32>
    %20 = vector.broadcast %19 : vector<32x1xf32> to vector<32x16xf32>
    %21 = arith.addf %18, %20 : vector<32x16xf32>
    %cst_19 = arith.constant 0.000000e+00 : f32
    %22 = vector.broadcast %cst_19 : f32 to vector<32x16xf32>
    %23 = arith.maximumf %21, %22 : vector<32x16xf32>
    %c0_20 = arith.constant 0 : index
    %c0_21 = arith.constant 0 : index
    %c0_22 = arith.constant 0 : index
    %24 = vector.load %arg4[%c0_20, %c0_21, %c0_22] : memref<1x32x16xf32, #tpu.memory_space<vmem>>, vector<1x32x16xf32>
    %25 = vector.shape_cast %24 : vector<1x32x16xf32> to vector<32x16xf32>
    %26 = vector.shape_cast %23 : vector<32x16xf32> to vector<1x32x16xf32>
    tpu.vector_store %arg4[%c0_20, %c0_21, %c0_22], %26 {strides = array<i32>} : memref<1x32x16xf32, #tpu.memory_space<vmem>>, vector<1x32x16xf32>,
    return
  }
  func.func @transform_0(%arg0: i32) -> (i32, i32, i32) {
    %c0_i32 = arith.constant 0 : i32
    %c0_i32_0 = arith.constant 0 : i32
    %c0_i32_1 = arith.constant 0 : i32
    return %arg0, %c0_i32, %c0_i32_0 : i32, i32, i32
  }
  func.func @transform_1(%arg0: i32) -> (i32, i32, i32) {
    %c0_i32 = arith.constant 0 : i32
    %c0_i32_0 = arith.constant 0 : i32
    %c0_i32_1 = arith.constant 0 : i32
    %c0_i32_2 = arith.constant 0 : i32
    return %c0_i32, %c0_i32_0, %c0_i32_1 : i32, i32, i32
  }
  func.func @transform_2(%arg0: i32) -> (i32, i32) {
    %c0_i32 = arith.constant 0 : i32
    %c0_i32_0 = arith.constant 0 : i32
    %c0_i32_1 = arith.constant 0 : i32
    return %c0_i32, %c0_i32_0 : i32, i32
  }
  func.func @transform_3(%arg0: i32) -> (i32, i32, i32) {
    %c0_i32 = arith.constant 0 : i32
    %c0_i32_0 = arith.constant 0 : i32
    %c0_i32_1 = arith.constant 0 : i32
    return %arg0, %c0_i32, %c0_i32_0 : i32, i32, i32
  }
}

module attributes {stable_mosaic.version = 11 : i64} {
  func.func @kernel(%arg0: i32, %arg1: memref<1x32x20xf32, #tpu.memory_space<vmem>>, %arg2: memref<3x32x32xf32, #tpu.memory_space<vmem>>, %arg3: memref<32x1xf32, #tpu.memory_space<vmem>>, %arg4: memref<1x32x16xf32, #tpu.memory_space<vmem>>, %arg5: memref<1x32x16xf32, #tpu.memory_space<vmem>>) attributes {dimension_semantics = [#tpu.dimension_semantics<parallel>], iteration_bounds = array<i64: 2>, scalar_prefetch = 0 : i64, scratch_operands = 0 : i64, tpu.core_type = #tpu.core_type<tc>, window_params = [{transform_indices = @transform_0, window_bounds = array<i64: 1, 32, 20>}, {pipeline_mode = #tpu.pipeline_mode<synchronous>, transform_indices = @transform_1, window_bounds = array<i64: 3, 32, 32>}, {pipeline_mode = #tpu.pipeline_mode<synchronous>, transform_indices = @transform_2, window_bounds = array<i64: 32, 1>}, {transform_indices = @transform_3, window_bounds = array<i64: 1, 32, 16>}, {transform_indices = @transform_4, window_bounds = array<i64: 1, 32, 16>}]} {
    %cst = arith.constant 0.000000e+00 : f32
    %0 = vector.broadcast %cst : f32 to vector<32x16xf32>
    %c0 = arith.constant 0 : index
    %c0_0 = arith.constant 0 : index
    %c0_1 = arith.constant 0 : index
    %1 = vector.load %arg1[%c0, %c0_0, %c0_1] : memref<1x32x20xf32, #tpu.memory_space<vmem>>, vector<1x32x16xf32>
    %2 = vector.shape_cast %1 : vector<1x32x16xf32> to vector<32x16xf32>
    %c0_2 = arith.constant 0 : index
    %c0_3 = arith.constant 0 : index
    %c0_4 = arith.constant 0 : index
    %3 = vector.load %arg2[%c0_2, %c0_3, %c0_4] : memref<3x32x32xf32, #tpu.memory_space<vmem>>, vector<1x32x32xf32>
    %4 = vector.shape_cast %3 : vector<1x32x32xf32> to vector<32x32xf32>
    %cst_5 = arith.constant dense<0.000000e+00> : vector<32x16xf32>
    %5 = tpu.matmul %4, %2, %cst_5 {dimension_numbers = #tpu.dot_dimension_numbers<[1], [0], [0], [1], [0, 0, 1, 1], [], []>} : vector<32x32xf32>, vector<32x16xf32>, vector<32x16xf32> -> vector<32x16xf32>
    %6 = arith.addf %0, %5 : vector<32x16xf32>
    %c0_6 = arith.constant 0 : index
    %c0_7 = arith.constant 0 : index
    %c2 = arith.constant 2 : index
    %7 = vector.load %arg1[%c0_6, %c0_7, %c2] : memref<1x32x20xf32, #tpu.memory_space<vmem>>, vector<1x32x16xf32>
    %8 = vector.shape_cast %7 : vector<1x32x16xf32> to vector<32x16xf32>
    %c1 = arith.constant 1 : index
    %c0_8 = arith.constant 0 : index
    %c0_9 = arith.constant 0 : index
    %9 = vector.load %arg2[%c1, %c0_8, %c0_9] : memref<3x32x32xf32, #tpu.memory_space<vmem>>, vector<1x32x32xf32>
    %10 = vector.shape_cast %9 : vector<1x32x32xf32> to vector<32x32xf32>
    %cst_10 = arith.constant dense<0.000000e+00> : vector<32x16xf32>
    %11 = tpu.matmul %10, %8, %cst_10 {dimension_numbers = #tpu.dot_dimension_numbers<[1], [0], [0], [1], [0, 0, 1, 1], [], []>} : vector<32x32xf32>, vector<32x16xf32>, vector<32x16xf32> -> vector<32x16xf32>
    %12 = arith.addf %6, %11 : vector<32x16xf32>
    %c0_11 = arith.constant 0 : index
    %c0_12 = arith.constant 0 : index
    %c4 = arith.constant 4 : index
    %13 = vector.load %arg1[%c0_11, %c0_12, %c4] : memref<1x32x20xf32, #tpu.memory_space<vmem>>, vector<1x32x16xf32>
    %14 = vector.shape_cast %13 : vector<1x32x16xf32> to vector<32x16xf32>
    %c2_13 = arith.constant 2 : index
    %c0_14 = arith.constant 0 : index
    %c0_15 = arith.constant 0 : index
    %15 = vector.load %arg2[%c2_13, %c0_14, %c0_15] : memref<3x32x32xf32, #tpu.memory_space<vmem>>, vector<1x32x32xf32>
    %16 = vector.shape_cast %15 : vector<1x32x32xf32> to vector<32x32xf32>
    %cst_16 = arith.constant dense<0.000000e+00> : vector<32x16xf32>
    %17 = tpu.matmul %16, %14, %cst_16 {dimension_numbers = #tpu.dot_dimension_numbers<[1], [0], [0], [1], [0, 0, 1, 1], [], []>} : vector<32x32xf32>, vector<32x16xf32>, vector<32x16xf32> -> vector<32x16xf32>
    %18 = arith.addf %12, %17 : vector<32x16xf32>
    %c0_17 = arith.constant 0 : index
    %c0_18 = arith.constant 0 : index
    %19 = vector.load %arg3[%c0_17, %c0_18] : memref<32x1xf32, #tpu.memory_space<vmem>>, vector<32x1xf32>
    %20 = vector.broadcast %19 : vector<32x1xf32> to vector<32x16xf32>
    %21 = arith.addf %18, %20 : vector<32x16xf32>
    %cst_19 = arith.constant 0.000000e+00 : f32
    %22 = vector.broadcast %cst_19 : f32 to vector<32x16xf32>
    %23 = arith.maximumf %21, %22 : vector<32x16xf32>
    %c0_20 = arith.constant 0 : index
    %c0_21 = arith.constant 0 : index
    %c0_22 = arith.constant 0 : index
    %24 = vector.load %arg4[%c0_20, %c0_21, %c0_22] : memref<1x32x16xf32, #tpu.memory_space<vmem>>, vector<1x32x16xf32>
    %25 = vector.shape_cast %24 : vector<1x32x16xf32> to vector<32x16xf32>
    %26 = arith.addf %23, %25 : vector<32x16xf32>
    %cst_23 = arith.constant 0.000000e+00 : f32
    %27 = vector.broadcast %cst_23 : f32 to vector<32x16xf32>
    %28 = arith.maximumf %26, %27 : vector<32x16xf32>
    %c0_24 = arith.constant 0 : index
    %c0_25 = arith.constant 0 : index
    %c0_26 = arith.constant 0 : index
    %29 = vector.load %arg5[%c0_24, %c0_25, %c0_26] : memref<1x32x16xf32, #tpu.memory_space<vmem>>, vector<1x32x16xf32>
    %30 = vector.shape_cast %29 : vector<1x32x16xf32> to vector<32x16xf32>
    %31 = vector.shape_cast %28 : vector<32x16xf32> to vector<1x32x16xf32>
    tpu.vector_store %arg5[%c0_24, %c0_25, %c0_26], %31 {strides = array<i32>} : memref<1x32x16xf32, #tpu.memory_space<vmem>>, vector<1x32x16xf32>,
    return
  }
  func.func @transform_0(%arg0: i32) -> (i32, i32, i32) {
    %c0_i32 = arith.constant 0 : i32
    %c0_i32_0 = arith.constant 0 : i32
    %c0_i32_1 = arith.constant 0 : i32
    return %arg0, %c0_i32, %c0_i32_0 : i32, i32, i32
  }
  func.func @transform_1(%arg0: i32) -> (i32, i32, i32) {
    %c0_i32 = arith.constant 0 : i32
    %c0_i32_0 = arith.constant 0 : i32
    %c0_i32_1 = arith.constant 0 : i32
    %c0_i32_2 = arith.constant 0 : i32
    return %c0_i32, %c0_i32_0, %c0_i32_1 : i32, i32, i32
  }
  func.func @transform_2(%arg0: i32) -> (i32, i32) {
    %c0_i32 = arith.constant 0 : i32
    %c0_i32_0 = arith.constant 0 : i32
    %c0_i32_1 = arith.constant 0 : i32
    return %c0_i32, %c0_i32_0 : i32, i32
  }
  func.func @transform_3(%arg0: i32) -> (i32, i32, i32) {
    %c0_i32 = arith.constant 0 : i32
    %c0_i32_0 = arith.constant 0 : i32
    %c0_i32_1 = arith.constant 0 : i32
    return %arg0, %c0_i32, %c0_i32_0 : i32, i32, i32
  }
  func.func @transform_4(%arg0: i32) -> (i32, i32, i32) {
    %c0_i32 = arith.constant 0 : i32
    %c0_i32_0 = arith.constant 0 : i32
    %c0_i32_1 = arith.constant 0 : i32
    return %arg0, %c0_i32, %c0_i32_0 : i32, i32, i32
  }
}

module attributes {stable_mosaic.version = 11 : i64} {
  func.func @_linear_kernel(%arg0: i32, %arg1: memref<2x32xf32, #tpu.memory_space<vmem>>, %arg2: memref<32x12xf32, #tpu.memory_space<vmem>>, %arg3: memref<1x12xf32, #tpu.memory_space<vmem>>, %arg4: memref<2x12xf32, #tpu.memory_space<vmem>>) attributes {dimension_semantics = [#tpu.dimension_semantics<parallel>], iteration_bounds = array<i64: 1>, scalar_prefetch = 0 : i64, scratch_operands = 0 : i64, tpu.core_type = #tpu.core_type<tc>, window_params = [{pipeline_mode = #tpu.pipeline_mode<synchronous>, transform_indices = @transform_0, window_bounds = array<i64: 2, 32>}, {transform_indices = @transform_1, window_bounds = array<i64: 32, 12>}, {transform_indices = @transform_2, window_bounds = array<i64: 1, 12>}, {transform_indices = @transform_3, window_bounds = array<i64: 2, 12>}]} {
    %c0 = arith.constant 0 : index
    %c0_0 = arith.constant 0 : index
    %0 = vector.load %arg1[%c0, %c0_0] : memref<2x32xf32, #tpu.memory_space<vmem>>, vector<2x32xf32>
    %c0_1 = arith.constant 0 : index
    %c0_2 = arith.constant 0 : index
    %1 = vector.load %arg2[%c0_1, %c0_2] : memref<32x12xf32, #tpu.memory_space<vmem>>, vector<32x12xf32>
    %cst = arith.constant dense<0.000000e+00> : vector<2x12xf32>
    %2 = tpu.matmul %0, %1, %cst {dimension_numbers = #tpu.dot_dimension_numbers<[1], [0], [0], [1], [0, 0, 1, 1], [], []>} : vector<2x32xf32>, vector<32x12xf32>, vector<2x12xf32> -> vector<2x12xf32>
    %c0_3 = arith.constant 0 : index
    %c0_4 = arith.constant 0 : index
    %3 = vector.load %arg3[%c0_3, %c0_4] : memref<1x12xf32, #tpu.memory_space<vmem>>, vector<1x12xf32>
    %4 = vector.broadcast %3 : vector<1x12xf32> to vector<2x12xf32>
    %5 = arith.addf %2, %4 : vector<2x12xf32>
    %c0_5 = arith.constant 0 : index
    %c0_6 = arith.constant 0 : index
    %6 = vector.load %arg4[%c0_5, %c0_6] : memref<2x12xf32, #tpu.memory_space<vmem>>, vector<2x12xf32>
    tpu.vector_store %arg4[%c0_5, %c0_6], %5 {strides = array<i32>} : memref<2x12xf32, #tpu.memory_space<vmem>>, vector<2x12xf32>,
    return
  }
  func.func @transform_0(%arg0: i32) -> (i32, i32) {
    %c0_i32 = arith.constant 0 : i32
    %c0_i32_0 = arith.constant 0 : i32
    %c0_i32_1 = arith.constant 0 : i32
    return %c0_i32, %c0_i32_0 : i32, i32
  }
  func.func @transform_1(%arg0: i32) -> (i32, i32) {
    %c0_i32 = arith.constant 0 : i32
    %c0_i32_0 = arith.constant 0 : i32
    return %c0_i32, %arg0 : i32, i32
  }
  func.func @transform_2(%arg0: i32) -> (i32, i32) {
    %c0_i32 = arith.constant 0 : i32
    %c0_i32_0 = arith.constant 0 : i32
    return %c0_i32, %arg0 : i32, i32
  }
  func.func @transform_3(%arg0: i32) -> (i32, i32) {
    %c0_i32 = arith.constant 0 : i32
    %c0_i32_0 = arith.constant 0 : i32
    return %c0_i32, %arg0 : i32, i32
  }
}

module attributes {stable_mosaic.version = 11 : i64} {
  func.func @_linear_kernel(%arg0: i32, %arg1: memref<2x32xf32, #tpu.memory_space<vmem>>, %arg2: memref<32x60xf32, #tpu.memory_space<vmem>>, %arg3: memref<1x60xf32, #tpu.memory_space<vmem>>, %arg4: memref<2x60xf32, #tpu.memory_space<vmem>>) attributes {dimension_semantics = [#tpu.dimension_semantics<parallel>], iteration_bounds = array<i64: 1>, scalar_prefetch = 0 : i64, scratch_operands = 0 : i64, tpu.core_type = #tpu.core_type<tc>, window_params = [{pipeline_mode = #tpu.pipeline_mode<synchronous>, transform_indices = @transform_0, window_bounds = array<i64: 2, 32>}, {transform_indices = @transform_1, window_bounds = array<i64: 32, 60>}, {transform_indices = @transform_2, window_bounds = array<i64: 1, 60>}, {transform_indices = @transform_3, window_bounds = array<i64: 2, 60>}]} {
    %c0 = arith.constant 0 : index
    %c0_0 = arith.constant 0 : index
    %0 = vector.load %arg1[%c0, %c0_0] : memref<2x32xf32, #tpu.memory_space<vmem>>, vector<2x32xf32>
    %c0_1 = arith.constant 0 : index
    %c0_2 = arith.constant 0 : index
    %1 = vector.load %arg2[%c0_1, %c0_2] : memref<32x60xf32, #tpu.memory_space<vmem>>, vector<32x60xf32>
    %cst = arith.constant dense<0.000000e+00> : vector<2x60xf32>
    %2 = tpu.matmul %0, %1, %cst {dimension_numbers = #tpu.dot_dimension_numbers<[1], [0], [0], [1], [0, 0, 1, 1], [], []>} : vector<2x32xf32>, vector<32x60xf32>, vector<2x60xf32> -> vector<2x60xf32>
    %c0_3 = arith.constant 0 : index
    %c0_4 = arith.constant 0 : index
    %3 = vector.load %arg3[%c0_3, %c0_4] : memref<1x60xf32, #tpu.memory_space<vmem>>, vector<1x60xf32>
    %4 = vector.broadcast %3 : vector<1x60xf32> to vector<2x60xf32>
    %5 = arith.addf %2, %4 : vector<2x60xf32>
    %c0_5 = arith.constant 0 : index
    %c0_6 = arith.constant 0 : index
    %6 = vector.load %arg4[%c0_5, %c0_6] : memref<2x60xf32, #tpu.memory_space<vmem>>, vector<2x60xf32>
    tpu.vector_store %arg4[%c0_5, %c0_6], %5 {strides = array<i32>} : memref<2x60xf32, #tpu.memory_space<vmem>>, vector<2x60xf32>,
    return
  }
  func.func @transform_0(%arg0: i32) -> (i32, i32) {
    %c0_i32 = arith.constant 0 : i32
    %c0_i32_0 = arith.constant 0 : i32
    %c0_i32_1 = arith.constant 0 : i32
    return %c0_i32, %c0_i32_0 : i32, i32
  }
  func.func @transform_1(%arg0: i32) -> (i32, i32) {
    %c0_i32 = arith.constant 0 : i32
    %c0_i32_0 = arith.constant 0 : i32
    return %c0_i32, %arg0 : i32, i32
  }
  func.func @transform_2(%arg0: i32) -> (i32, i32) {
    %c0_i32 = arith.constant 0 : i32
    %c0_i32_0 = arith.constant 0 : i32
    return %c0_i32, %arg0 : i32, i32
  }
  func.func @transform_3(%arg0: i32) -> (i32, i32) {
    %c0_i32 = arith.constant 0 : i32
    %c0_i32_0 = arith.constant 0 : i32
    return %c0_i32, %arg0 : i32, i32
  }
}

</mosaic_0001>

<bundles_post_ra>
// kernel: rnn_forward.8
= control target key start
LH: loop header
LB: loop body
LE: loop exit
PB: predicated region body
PF: predicated region fallthrough
CT: control target
= control target key end

     0   :  { %s371_s12 = smov 0   ;;  %s416_s0 = inlined_call_operand.vmem [shape: f32[2,12,16], index: 0, kind: input, shape index: {}]   ;;  %s417_s1 = inlined_call_operand.vmem [shape: f32[1,32,12], index: 1, kind: input, shape index: {}]   ;;  %s418_s2 = inlined_call_operand.vmem [shape: f32[32,1], index: 2, kind: input, shape index: {}]   ;;  %s419_s3 = inlined_call_operand.vmem [shape: f32[2,32,16], index: 3, kind: output, shape index: {}]  }
   0x1 LB: > { %s307_s13 = sadd.s32 4294967295, %s348_s12   ;;  %p311_p0 = scmp.ge.s32.totalorder %s348_s12, 1  ;;  %s348_s12 = sphi %s371_s12, %s13_s12  }
   0x2   : > { %p137_p1 = scmp.lt.s32.totalorder %s348_s12, 3 }
   0x4   : > { %p138_p2 = pnand %p311_p0, %p137_p1 }
   0x5   : > { %p161_p3 = scmp.lt.s32.totalorder (!%p138_p2), %s307_s13, 1 }
   0x6   : > { %141 = sbr.rel (%p138_p2) target bundleno = 156 (0x9c), region = 32 }
   0xb   : > { %v350_v0 = vmov 0   ;;  %v179_v1 = vld [vmem:[%s418_s2 + $0x10] sm:$0xff]  ;;  %s421_s13 = smov (!%p161_p3, %s307_s13), 1  ;;  %v177_v2 = vld [vmem:[%s418_s2] sm:$0xff]  ;;  %vm214_vm0 = vcmask 1043456   ;;  %vm201_vm1 = vcmask 97280  }
   0xc   : > { %341 = vset.pattern.permute.xlu1 %v350_v0  ;;  %340 = vset.pattern.permute.xlu0 %v350_v0  ;;  %s323_s18 = sshll.u32 %s421_s13, 4  ;;  %v173_v5 = vld [vmem:[%s417_s1] sm:$0xff]  ;;  %v174_v6 = vld [vmem:[%s417_s1 + $0x8] sm:$0xff]  ;;  %v175_v7 = vld [vmem:[%s417_s1 + $0x10] sm:$0xff]  ;;  %s324_s7 = sshll.u32 %s421_s13, 5  ;;  %vm247_vm2 = vcmask 130048  }
   0xd   : > { %193 = vperm.xlu1 %341, %v179_v1   ;;  %183 = vperm.xlu0 %340, %v177_v2   ;;  %s165_s21 = scalar_lea.vmem %s416_s0, %s323_s18  ;;  %v176_v8 = vld [vmem:[%s417_s1 + $0x18] sm:$0xff]  ;;  %v178_v10 = vld [vmem:[%s418_s2 + $0x8] sm:$0xff]  ;;  %s170_s10 = scalar_lea.vmem %s419_s3, %s324_s7 }
   0xe   : > { %v172_v3 = vld [vmem:[%s165_s21 + $0x8] sm:$0xf]  ;;  %v171_v4 = vld [vmem:[%s165_s21] sm:$0xff]  ;;  %v180_v9 = vld [vmem:[%s418_s2 + $0x18] sm:$0xff] }
   0xf   : > { %316 = vmatpush.msk.msra.mxu0 %vm214_vm0, %v172_v3  ;;  %325 = vmatpush.msk.msra.mxu1 %vm214_vm0, %v172_v3 }
  0x10   : > { %326 = vmatpush.msk.msra.mxu2 %vm214_vm0, %v172_v3  ;;  %327 = vmatpush.msk.msra.mxu3 %vm214_vm0, %v172_v3 }
  0x11   : > { %233 = vmatpush.msra.mxu0 %v171_v4  ;;  %328 = vmatpush.msra.mxu1 %v171_v4 }
  0x12   : > { %329 = vmatpush.msra.mxu2 %v171_v4  ;;  %330 = vmatpush.msra.mxu3 %v171_v4 }
  0x13   : > { %317 = vmatmul.msk.f32.vlgmr.msra.gmra.mxu0 %vm201_vm1, %v173_v5  ;;  %318 = vmatmul.msk.f32.vlgmr.msra.gmra.mxu1 %vm201_vm1, %v174_v6 }
  0x14   : > { %319 = vmatmul.msk.f32.vlgmr.msra.gmra.mxu2 %vm201_vm1, %v175_v7  ;;  %320 = vmatmul.msk.f32.vlgmr.msra.gmra.mxu3 %vm201_vm1, %v176_v8 }
  0x15   : > { %198 = vperm.xlu1 %341, %v180_v9   ;;  %188 = vperm.xlu0 %340, %v178_v10  }
  0x7f   : > { %v184_v11 = vpop.permute.xlu0 %183  ;;  %v194_v12 = vpop.permute.xlu1 %193 }
  0x87   : > { %v189_v13 = vpop.permute.xlu0 %188  ;;  %v199_v18 = vpop.permute.xlu1 %198 }
  0x90   : > { %v235_v14 = vpop.f32.mrf.mxu0  ;;  %v238_v15 = vpop.f32.mrf.mxu1 }
  0x91   : > { %v236_v16 = vadd.f32 %v235_v14, %v184_v11  ;;  %v239_v17 = vadd.f32 %v238_v15, %v189_v13 }
  0x93   : > { %248 = vst.msk [vmem:[%s170_s10] sm:$0xff] %vm247_vm2, %v236_v16 }
  0x94   : > { %249 = vst.msk [vmem:[%s170_s10 + $0x8] sm:$0xff] %vm247_vm2, %v239_v17 }
  0x97   : > { %v241_v19 = vpop.f32.mrf.mxu2  ;;  %v244_v20 = vpop.f32.mrf.mxu3 }
  0x98   : > { %v242_v21 = vadd.f32 %v241_v19, %v194_v12  ;;  %v245_v22 = vadd.f32 %v244_v20, %v199_v18 }
  0x9a   : > { %250 = vst.msk [vmem:[%s170_s10 + $0x10] sm:$0xff] %vm247_vm2, %v242_v21 }
  0x9b   : > { %251 = vst.msk [vmem:[%s170_s10 + $0x18] sm:$0xff] %vm247_vm2, %v245_v22 }
  0x9c PF: > { %s13_s12 = sadd.s32 1, %s348_s12  }
  0x9d   : > { %p10_p4 = scmp.ge.s32.totalorder %s13_s12, 4  }
  0x9f   :  { %12 = sbr.rel (!%p10_p4) target bundleno = 1 (0x1), region = 62 }

// kernel: rnn_forward.7
= control target key start
LH: loop header
LB: loop body
LE: loop exit
PB: predicated region body
PF: predicated region fallthrough
CT: control target
= control target key end

     0   :  { %s513_s12 = smov 0   ;;  %s604_s0 = inlined_call_operand.vmem [shape: f32[2,12,18], index: 0, kind: input, shape index: {}]   ;;  %s605_s1 = inlined_call_operand.vmem [shape: f32[3,32,12], index: 1, kind: input, shape index: {}]   ;;  %s606_s2 = inlined_call_operand.vmem [shape: f32[32,1], index: 2, kind: input, shape index: {}]   ;;  %s607_s3 = inlined_call_operand.vmem [shape: f32[2,32,16], index: 3, kind: output, shape index: {}]  }
   0x1 LB: > { %s426_s13 = sadd.s32 4294967295, %s488_s12   ;;  %p430_p0 = scmp.ge.s32.totalorder %s488_s12, 1  ;;  %s488_s12 = sphi %s513_s12, %s13_s12  }
   0x2   : > { %p137_p1 = scmp.lt.s32.totalorder %s488_s12, 3 }
   0x4   : > { %p138_p2 = pnand %p430_p0, %p137_p1 }
   0x5   : > { %p161_p3 = scmp.lt.s32.totalorder (!%p138_p2), %s426_s13, 1  ;;  %s490_s18 = smov (!%p138_p2), 127  }
   0x6   : > { %141 = sbr.rel (%p138_p2) target bundleno = 296 (0x128), region = 32  ;;  %s491_s19 = smov (!%p138_p2), 126  }
   0xb   : > { %s609_s13 = smov (!%p161_p3, %s426_s13), 1  ;;  %vm202_vm0 = vcmask 1043456   ;;  %vm189_vm1 = vcmask 97280   ;;  %v174_v2 = vld [vmem:[%s605_s1 + $0x8] sm:$0xff]  ;;  %v175_v3 = vld [vmem:[%s605_s1 + $0x10] sm:$0xff]  ;;  %v334_v5 = vld [vmem:[%s606_s2] sm:$0xff] }
   0xc   : > { %s460_s14 = sshll.u32 %s609_s13, 4  ;;  %v336_v4 = vld [vmem:[%s606_s2 + $0x10] sm:$0xff]  ;;  %v492_v6 = vmov 0   ;;  %v337_v7 = vld [vmem:[%s606_s2 + $0x18] sm:$0xff]  ;;  %v335_v11 = vld [vmem:[%s606_s2 + $0x8] sm:$0xff]  ;;  %s461_s27 = sshll.u32 %s609_s13, 5 }
   0xd   : > { %s165_s17 = scalar_lea.vmem %s604_s0, %s460_s14  ;;  %480 = vset.pattern.permute.xlu0 %v492_v6  ;;  %481 = vset.pattern.permute.xlu1 %v492_v6  ;;  %v176_v8 = vld [vmem:[%s605_s1 + $0x18] sm:$0xff]  ;;  %v435_v12 = vld [vmem:[%s605_s1 + $0x20] sm:$0xff]  ;;  %v436_v13 = vld [vmem:[%s605_s1 + $0x28] sm:$0xff]  ;;  %s170_s30 = scalar_lea.vmem %s607_s3, %s461_s27  ;;  %vm366_vm2 = vcmask 130048  }
   0xe   : > { %v172_v0 = vld [vmem:[%s165_s17 + $0x8] sm:$0xf]  ;;  %v171_v1 = vld [vmem:[%s165_s17] sm:$0xff]  ;;  %479 = vset.pattern.permute.xlu2 %v492_v6  ;;  %v437_v17 = vld [vmem:[%s605_s1 + $0x30] sm:$0xff] }
   0xf   : > { %186 = vrot.lane.b32.xlu0 %v172_v0, %s490_s18  ;;  %284 = vrot.lane.b32.xlu1 %v172_v0, %s491_s19  ;;  %v450_v16 = vld [vmem:[%s605_s1 + $0x48] sm:$0xff]  ;;  %v173_v18 = vld [vmem:[%s605_s1] sm:$0xff] }
  0x10   : > { %464 = vmatpush.msk.msra.mxu1 %vm202_vm0, %v172_v0  ;;  %340 = vperm.xlu2 %479, %v334_v5   ;;  %v451_v19 = vld [vmem:[%s605_s1 + $0x50] sm:$0xff]  ;;  %v438_v20 = vld [vmem:[%s605_s1 + $0x38] sm:$0xff]  ;;  %v449_v21 = vld [vmem:[%s605_s1 + $0x40] sm:$0xff] }
  0x11   : > { %v452_v22 = vld [vmem:[%s605_s1 + $0x58] sm:$0xff] }
  0x12   : > { %465 = vmatpush.msra.mxu1 %v171_v1 }
  0x13   : > { %446 = vmatmul.msk.f32.vlgmr.msra.gmra.mxu1 %vm189_vm1, %v174_v2 }
  0x17   : > { %184 = vrot.lane.b32.xlu0 %v171_v1, %s490_s18  ;;  %282 = vrot.lane.b32.xlu1 %v171_v1, %s491_s19 }
  0x18   : > { %345 = vperm.xlu2 %479, %v335_v11  }
  0x1b   : > { %447 = vmatmul.msk.f32.gmra.mxu1 %vm189_vm1, %v175_v3 }
  0x1f   : > { %350 = vperm.xlu0 %480, %v336_v4   ;;  %355 = vperm.xlu1 %481, %v337_v7  }
  0x23   : > { %448 = vmatmul.msk.f32.gmra.mxu1 %vm189_vm1, %v176_v8 }
  0x6a   : > { %v341_v23 = vpop.permute.xlu2 %340 }
  0x72   : > { %v346_v28 = vpop.permute.xlu2 %345 }
  0x81   : > { %v187_v9 = vpop.permute.xlu0 %186  ;;  %v285_v10 = vpop.permute.xlu1 %284 }
  0x82   : > { %439 = vmatpush.msk.msra.mxu0 %vm202_vm0, %v187_v9  ;;  %462 = vmatpush.msk.msra.mxu3 %vm202_vm0, %v187_v9 }
  0x83   : > { %466 = vmatpush.msk.msra.mxu2 %vm202_vm0, %v285_v10 }
  0x89   : > { %v185_v14 = vpop.permute.xlu0 %184  ;;  %v283_v15 = vpop.permute.xlu1 %282 }
  0x8a   : > { %220 = vmatpush.msra.mxu0 %v185_v14  ;;  %463 = vmatpush.msra.mxu3 %v185_v14 }
  0x8b   : > { %440 = vmatmul.msk.f32.vlgmr.msra.gmra.mxu0 %vm189_vm1, %v435_v12  ;;  %441 = vmatmul.msk.f32.vlgmr.msra.gmra.mxu3 %vm189_vm1, %v436_v13 }
  0x8c   : > { %444 = vmatpush.msk.msrb.mxu0 %vm202_vm0, %v172_v0  ;;  %467 = vmatpush.msra.mxu2 %v283_v15 }
  0x8d   : > { %455 = vmatmul.msk.f32.vlgmr.msra.gmra.mxu2 %vm189_vm1, %v450_v16 }
  0x8e   : > { %263 = vmatpush.msrb.mxu0 %v171_v1 }
  0x90   : > { %453 = vmatpush.msk.msra.mxu0 %vm202_vm0, %v285_v10  ;;  %v268_v25 = vpop.f32.mrf.mxu1 }
  0x91   : > { %v351_v38 = vpop.permute.xlu0 %350  ;;  %v356_v51 = vpop.permute.xlu1 %355 }
  0x92   : > { %316 = vmatpush.msra.mxu0 %v283_v15 }
  0x93   : > { %442 = vmatmul.msk.f32.gmra.mxu3 %vm189_vm1, %v437_v17  ;;  %445 = vmatmul.msk.f32.vlgmr.msrb.gmra.mxu0 %vm189_vm1, %v173_v18 }
  0x95   : > { %456 = vmatmul.msk.f32.gmra.mxu2 %vm189_vm1, %v451_v19 }
  0x98   : > { %v271_v32 = vpop.f32.mrf.mxu1 }
  0x9b   : > { %443 = vmatmul.msk.f32.gmra.mxu3 %vm189_vm1, %v438_v20  ;;  %454 = vmatmul.msk.f32.vlgmr.msra.gmra.mxu0 %vm189_vm1, %v449_v21 }
  0x9d   : > { %457 = vmatmul.msk.f32.gmra.mxu2 %vm189_vm1, %v452_v22 }
  0xa0   : > { %v274_v45 = vpop.f32.mrf.mxu1 }
 0x108   : > { %v222_v24 = vpop.f32.mrf.mxu0 }
 0x10e   : > { %v225_v26 = vpop.f32.mrf.mxu3 }
 0x10f   : > { %v269_v27 = vadd.f32 %v268_v25, %v225_v26 }
 0x110   : > { %v265_v29 = vpop.f32.mrf.mxu0  ;;  %v321_v30 = vpop.f32.mrf.mxu2 }
 0x111   : > { %v331_v31 = vadd.f32 %v321_v30, %v269_v27  ;;  %v266_v36 = vadd.f32 %v265_v29, %v222_v24 }
 0x113   : > { %v359_v33 = vadd.f32 %v346_v28, %v331_v31 }
 0x115   : > { %v363_v34 = vmax.f32 %v359_v33, 0.0 }
 0x116   : > { %v228_v35 = vpop.f32.mrf.mxu3 }
 0x117   : > { %368 = vst.msk [vmem:[%s170_s30 + $0x8] sm:$0xff] %vm366_vm2, %v363_v34  ;;  %v272_v37 = vadd.f32 %v271_v32, %v228_v35 }
 0x118   : > { %v318_v39 = vpop.f32.mrf.mxu0  ;;  %v324_v40 = vpop.f32.mrf.mxu2 }
 0x119   : > { %v330_v41 = vadd.f32 %v318_v39, %v266_v36  ;;  %v332_v42 = vadd.f32 %v324_v40, %v272_v37 }
 0x11b   : > { %v358_v43 = vadd.f32 %v341_v23, %v330_v41  ;;  %v360_v44 = vadd.f32 %v351_v38, %v332_v42 }
 0x11d   : > { %v362_v46 = vmax.f32 %v358_v43, 0.0  ;;  %v364_v47 = vmax.f32 %v360_v44, 0.0 }
 0x11e   : > { %v231_v48 = vpop.f32.mrf.mxu3 }
 0x11f   : > { %367 = vst.msk [vmem:[%s170_s30] sm:$0xff] %vm366_vm2, %v362_v46  ;;  %v275_v49 = vadd.f32 %v274_v45, %v231_v48 }
 0x120   : > { %369 = vst.msk [vmem:[%s170_s30 + $0x10] sm:$0xff] %vm366_vm2, %v364_v47  ;;  %v327_v50 = vpop.f32.mrf.mxu2 }
 0x121   : > { %v333_v52 = vadd.f32 %v327_v50, %v275_v49 }
 0x123   : > { %v361_v53 = vadd.f32 %v356_v51, %v333_v52 }
 0x125   : > { %v365_v54 = vmax.f32 %v361_v53, 0.0 }
 0x127   : > { %370 = vst.msk [vmem:[%s170_s30 + $0x18] sm:$0xff] %vm366_vm2, %v365_v54 }
 0x128 PF: > { %s13_s12 = sadd.s32 1, %s488_s12  }
 0x129   : > { %p10_p4 = scmp.ge.s32.totalorder %s13_s12, 4  }
 0x12b   :  { %12 = sbr.rel (!%p10_p4) target bundleno = 1 (0x1), region = 64 }

// kernel: rnn_forward.9
= control target key start
LH: loop header
LB: loop body
LE: loop exit
PB: predicated region body
PF: predicated region fallthrough
CT: control target
= control target key end

     0   :  { %s626_s15 = smov 0   ;;  %s726_s0 = inlined_call_operand.vmem [shape: f32[2,32,18], index: 0, kind: input, shape index: {}]   ;;  %s727_s1 = inlined_call_operand.vmem [shape: f32[3,32,32], index: 1, kind: input, shape index: {}]   ;;  %s728_s2 = inlined_call_operand.vmem [shape: f32[32,1], index: 2, kind: input, shape index: {}]   ;;  %s729_s3 = inlined_call_operand.vmem [shape: f32[2,32,16], index: 3, kind: input, shape index: {}]   ;;  %s730_s4 = inlined_call_operand.vmem [shape: f32[2,32,16], index: 4, kind: output, shape index: {}]  }
   0x1 LB: > { %s508_s16 = sadd.s32 4294967295, %s596_s15   ;;  %p512_p0 = scmp.ge.s32.totalorder %s596_s15, 1  ;;  %s596_s15 = sphi %s626_s15, %s14_s15  }
   0x2   : > { %p172_p1 = scmp.lt.s32.totalorder %s596_s15, 3 }
   0x4   : > { %p173_p2 = pnand %p512_p0, %p172_p1 }
   0x5   : > { %p203_p3 = scmp.lt.s32.totalorder (!%p173_p2), %s508_s16, 1  ;;  %s598_s21 = smov (!%p173_p2), 127  }
   0x6   : > { %176 = sbr.rel (%p173_p2) target bundleno = 308 (0x134), region = 36  ;;  %s599_s22 = smov (!%p173_p2), 126  }
   0xb   : > { %s732_s16 = smov (!%p203_p3, %s508_s16), 1  ;;  %vm247_vm0 = vcmask 261120   ;;  %v223_v6 = vld [vmem:[%s727_s1 + $0x8] sm:$0xff]  ;;  %v224_v7 = vld [vmem:[%s727_s1 + $0x10] sm:$0xff]  ;;  %v600_v14 = vmov 0   ;;  %v225_v15 = vld [vmem:[%s727_s1 + $0x18] sm:$0xff] }
   0xc   : > { %s634_s17 = sshll.u32 %s732_s16, 5  ;;  %v394_v13 = vld [vmem:[%s728_s2 + $0x10] sm:$0xff]  ;;  %588 = vset.pattern.permute.xlu0 %v600_v14  ;;  %589 = vset.pattern.permute.xlu1 %v600_v14  ;;  %v392_v16 = vld [vmem:[%s728_s2] sm:$0xff]  ;;  %v520_v19 = vld [vmem:[%s727_s1 + $0x28] sm:$0xff]  ;;  %vm436_vm1 = vcmask 130048  }
   0xd   : > { %s207_s20 = scalar_lea.vmem %s726_s0, %s634_s17  ;;  %587 = vset.pattern.permute.xlu2 %v600_v14  ;;  %v519_v18 = vld [vmem:[%s727_s1 + $0x20] sm:$0xff]  ;;  %v395_v23 = vld [vmem:[%s728_s2 + $0x18] sm:$0xff]  ;;  %v393_v26 = vld [vmem:[%s728_s2 + $0x8] sm:$0xff]  ;;  %s709_s7 = scalar_lea.vmem %s729_s3, %s634_s17 }
   0xe   : > { %v220_v0 = vld [vmem:[%s207_s20 + $0x10] sm:$0xff]  ;;  %v221_v1 = vld [vmem:[%s207_s20 + $0x18] sm:$0xff]  ;;  %v640_v2 = vld [vmem:[%s207_s20] sm:$0xff]  ;;  %398 = vperm.xlu2 %587, %v392_v16   ;;  %s217_s10 = scalar_lea.vmem %s730_s4, %s634_s17 }
   0xf   : > { %v567_v3 = vpack.i.bf16 %v220_v0, %v221_v1  ;;  %v219_v4 = vld [vmem:[%s207_s20 + $0x8] sm:$0xff]  ;;  %548 = vmatpush.msra.mxu1 %v221_v1  ;;  %v222_v29 = vld [vmem:[%s727_s1] sm:$0xff]  ;;  %v521_v30 = vld [vmem:[%s727_s1 + $0x30] sm:$0xff] }
  0x10   : > { %v577_v5 = vpack.i.bf16 %v640_v2, %v219_v4  ;;  %v532_v28 = vld [vmem:[%s727_s1 + $0x48] sm:$0xff]  ;;  %v533_v31 = vld [vmem:[%s727_s1 + $0x50] sm:$0xff]  ;;  %v531_v32 = vld [vmem:[%s727_s1 + $0x40] sm:$0xff] }
  0x11   : > { %568 = vrot.lane.b32.xlu0 %v567_v3, %s598_s21  ;;  %549 = vmatpush.msra.mxu1 %v220_v0  ;;  %v522_v33 = vld [vmem:[%s727_s1 + $0x38] sm:$0xff]  ;;  %v425_v49 = vld [vmem:[%s709_s7 + $0x8] sm:$0xff]  ;;  %v424_v55 = vld [vmem:[%s709_s7] sm:$0xff] }
  0x12   : > { %578 = vrot.lane.b32.xlu1 %v577_v5, %s598_s21  ;;  %v534_v34 = vld [vmem:[%s727_s1 + $0x58] sm:$0xff] }
  0x13   : > { %550 = vmatpush.msra.mxu1 %v219_v4 }
  0x15   : > { %551 = vmatpush.msra.mxu1 %v640_v2 }
  0x16   : > { %528 = vmatmul.msk.f32.vlgmr.msra.gmra.mxu1 %vm247_vm0, %v223_v6  ;;  %403 = vperm.xlu2 %587, %v393_v26  }
  0x19   : > { %573 = vrot.lane.b32.xlu0 %v567_v3, %s599_s22 }
  0x1a   : > { %583 = vrot.lane.b32.xlu1 %v577_v5, %s599_s22 }
  0x1e   : > { %529 = vmatmul.msk.f32.gmra.mxu1 %vm247_vm0, %v224_v7 }
  0x21   : > { %408 = vperm.xlu0 %588, %v394_v13  }
  0x22   : > { %413 = vperm.xlu1 %589, %v395_v23  }
  0x26   : > { %530 = vmatmul.msk.f32.gmra.mxu1 %vm247_vm0, %v225_v15 }
  0x68   : > { %v399_v36 = vpop.permute.xlu2 %398 }
  0x70   : > { %v404_v41 = vpop.permute.xlu2 %403 }
  0x83   : > { %v569_v8 = vpop.permute.xlu0 %568 }
  0x84   : > { %v570_v9 = vunpack.i.l.bf16 %v569_v8  ;;  %v579_v10 = vpop.permute.xlu1 %578  ;;  %v571_v11 = vunpack.i.h.bf16 %v569_v8 }
  0x85   : > { %v580_v12 = vunpack.i.l.bf16 %v579_v10  ;;  %v581_v17 = vunpack.i.h.bf16 %v579_v10 }
  0x86   : > { %272 = vmatpush.msra.mxu0 %v570_v9  ;;  %544 = vmatpush.msra.mxu3 %v570_v9 }
  0x88   : > { %273 = vmatpush.msra.mxu0 %v571_v11  ;;  %545 = vmatpush.msra.mxu3 %v571_v11  ;;  %v427_v11 = vld [vmem:[%s709_s7 + $0x18] sm:$0xff] }
  0x8a   : > { %274 = vmatpush.msra.mxu0 %v580_v12  ;;  %546 = vmatpush.msra.mxu3 %v580_v12 }
  0x8b   : > { %v574_v20 = vpop.permute.xlu0 %573 }
  0x8c   : > { %275 = vmatpush.msra.mxu0 %v581_v17  ;;  %547 = vmatpush.msra.mxu3 %v581_v17  ;;  %v575_v21 = vunpack.i.l.bf16 %v574_v20  ;;  %v584_v22 = vpop.permute.xlu1 %583  ;;  %v576_v24 = vunpack.i.h.bf16 %v574_v20 }
  0x8d   : > { %523 = vmatmul.msk.f32.vlgmr.msra.gmra.mxu0 %vm247_vm0, %v519_v18  ;;  %524 = vmatmul.msk.f32.vlgmr.msra.gmra.mxu3 %vm247_vm0, %v520_v19  ;;  %v585_v25 = vunpack.i.l.bf16 %v584_v22  ;;  %v586_v27 = vunpack.i.h.bf16 %v584_v22 }
  0x8e   : > { %313 = vmatpush.msrb.mxu0 %v221_v1  ;;  %552 = vmatpush.msra.mxu2 %v575_v21 }
  0x90   : > { %314 = vmatpush.msrb.mxu0 %v220_v0  ;;  %553 = vmatpush.msra.mxu2 %v576_v24 }
  0x92   : > { %315 = vmatpush.msrb.mxu0 %v219_v4  ;;  %554 = vmatpush.msra.mxu2 %v585_v25 }
  0x93   : > { %v321_v37 = vpop.f32.mrf.mxu1  ;;  %v409_v58 = vpop.permute.xlu0 %408 }
  0x94   : > { %316 = vmatpush.msrb.mxu0 %v640_v2  ;;  %555 = vmatpush.msra.mxu2 %v586_v27  ;;  %v426_v2 = vld [vmem:[%s709_s7 + $0x10] sm:$0xff]  ;;  %v414_v7 = vpop.permute.xlu1 %413 }
  0x95   : > { %536 = vmatmul.msk.f32.vlgmr.msra.gmra.mxu2 %vm247_vm0, %v532_v28  ;;  %527 = vmatmul.msk.f32.vlgmr.msrb.gmra.mxu0 %vm247_vm0, %v222_v29 }
  0x96   : > { %371 = vmatpush.msra.mxu0 %v575_v21  ;;  %525 = vmatmul.msk.f32.gmra.mxu3 %vm247_vm0, %v521_v30 }
  0x98   : > { %372 = vmatpush.msra.mxu0 %v576_v24 }
  0x9a   : > { %373 = vmatpush.msra.mxu0 %v585_v25 }
  0x9b   : > { %v324_v44 = vpop.f32.mrf.mxu1 }
  0x9c   : > { %374 = vmatpush.msra.mxu0 %v586_v27 }
  0x9d   : > { %537 = vmatmul.msk.f32.gmra.mxu2 %vm247_vm0, %v533_v31  ;;  %535 = vmatmul.msk.f32.vlgmr.msra.gmra.mxu0 %vm247_vm0, %v531_v32 }
  0x9e   : > { %526 = vmatmul.msk.f32.gmra.mxu3 %vm247_vm0, %v522_v33 }
  0xa3   : > { %v327_v63 = vpop.f32.mrf.mxu1 }
  0xa5   : > { %538 = vmatmul.msk.f32.gmra.mxu2 %vm247_vm0, %v534_v34 }
 0x10a   : > { %v277_v35 = vpop.f32.mrf.mxu0 }
 0x110   : > { %v280_v38 = vpop.f32.mrf.mxu3 }
 0x111   : > { %v322_v40 = vadd.f32 %v321_v37, %v280_v38 }
 0x112   : > { %v318_v39 = vpop.f32.mrf.mxu0 }
 0x113   : > { %v319_v42 = vadd.f32 %v318_v39, %v277_v35 }
 0x118   : > { %v379_v43 = vpop.f32.mrf.mxu2 }
 0x119   : > { %v389_v45 = vadd.f32 %v379_v43, %v322_v40  ;;  %v283_v46 = vpop.f32.mrf.mxu3 }
 0x11a   : > { %v376_v48 = vpop.f32.mrf.mxu0  ;;  %v325_v52 = vadd.f32 %v324_v44, %v283_v46 }
 0x11b   : > { %v417_v47 = vadd.f32 %v404_v41, %v389_v45  ;;  %v388_v50 = vadd.f32 %v376_v48, %v319_v42 }
 0x11d   : > { %v421_v51 = vmax.f32 %v417_v47, 0.0  ;;  %v416_v53 = vadd.f32 %v399_v36, %v388_v50 }
 0x11f   : > { %v429_v54 = vadd.f32 %v425_v49, %v421_v51  ;;  %v420_v56 = vmax.f32 %v416_v53, 0.0 }
 0x120   : > { %v382_v57 = vpop.f32.mrf.mxu2 }
 0x121   : > { %v433_v59 = vmax.f32 %v429_v54, 0.0  ;;  %v390_v60 = vadd.f32 %v382_v57, %v325_v52  ;;  %v428_v61 = vadd.f32 %v424_v55, %v420_v56  ;;  %v286_v62 = vpop.f32.mrf.mxu3 }
 0x122   : > { %v328_v4 = vadd.f32 %v327_v63, %v286_v62 }
 0x123   : > { %438 = vst.msk [vmem:[%s217_s10 + $0x8] sm:$0xff] %vm436_vm1, %v433_v59  ;;  %v418_v0 = vadd.f32 %v409_v58, %v390_v60  ;;  %v432_v1 = vmax.f32 %v428_v61, 0.0 }
 0x125   : > { %v422_v3 = vmax.f32 %v418_v0, 0.0  ;;  %437 = vst.msk [vmem:[%s217_s10] sm:$0xff] %vm436_vm1, %v432_v1 }
 0x127   : > { %v430_v5 = vadd.f32 %v426_v2, %v422_v3 }
 0x128   : > { %v385_v6 = vpop.f32.mrf.mxu2 }
 0x129   : > { %v434_v8 = vmax.f32 %v430_v5, 0.0  ;;  %v391_v9 = vadd.f32 %v385_v6, %v328_v4 }
 0x12b   : > { %439 = vst.msk [vmem:[%s217_s10 + $0x10] sm:$0xff] %vm436_vm1, %v434_v8  ;;  %v419_v10 = vadd.f32 %v414_v7, %v391_v9 }
 0x12d   : > { %v423_v12 = vmax.f32 %v419_v10, 0.0 }
 0x12f   : > { %v431_v13 = vadd.f32 %v427_v11, %v423_v12 }
 0x131   : > { %v435_v14 = vmax.f32 %v431_v13, 0.0 }
 0x133   : > { %440 = vst.msk [vmem:[%s217_s10 + $0x18] sm:$0xff] %vm436_vm1, %v435_v14 }
 0x134 PF: > { %s14_s15 = sadd.s32 1, %s596_s15  }
 0x135   : > { %p11_p4 = scmp.ge.s32.totalorder %s14_s15, 4  }
 0x137   :  { %13 = sbr.rel (!%p11_p4) target bundleno = 1 (0x1), region = 71 }

// kernel: rnn_forward.10
= control target key start
LH: loop header
LB: loop body
LE: loop exit
PB: predicated region body
PF: predicated region fallthrough
CT: control target
= control target key end

     0   :  { %s547_s12 = smov 0   ;;  %s640_s0 = inlined_call_operand.vmem [shape: f32[2,32,20], index: 0, kind: input, shape index: {}]   ;;  %s641_s1 = inlined_call_operand.vmem [shape: f32[3,32,32], index: 1, kind: input, shape index: {}]   ;;  %s642_s2 = inlined_call_operand.vmem [shape: f32[32,1], index: 2, kind: input, shape index: {}]   ;;  %s643_s3 = inlined_call_operand.vmem [shape: f32[2,32,16], index: 3, kind: output, shape index: {}]  }
   0x1 LB: > { %s437_s13 = sadd.s32 4294967295, %s522_s12   ;;  %p441_p0 = scmp.ge.s32.totalorder %s522_s12, 1  ;;  %s522_s12 = sphi %s547_s12, %s13_s12  }
   0x2   : > { %p137_p1 = scmp.lt.s32.totalorder %s522_s12, 3 }
   0x4   : > { %p138_p2 = pnand %p441_p0, %p137_p1 }
   0x5   : > { %p161_p3 = scmp.lt.s32.totalorder (!%p138_p2), %s437_s13, 1  ;;  %s524_s18 = smov (!%p138_p2), 126  }
   0x6   : > { %141 = sbr.rel (%p138_p2) target bundleno = 304 (0x130), region = 32  ;;  %s525_s19 = smov (!%p138_p2), 124  }
   0xb   : > { %s645_s13 = smov (!%p161_p3, %s437_s13), 1  ;;  %vm200_vm0 = vcmask 261120   ;;  %v176_v6 = vld [vmem:[%s641_s1 + $0x8] sm:$0xff]  ;;  %v177_v7 = vld [vmem:[%s641_s1 + $0x10] sm:$0xff]  ;;  %v526_v14 = vmov 0   ;;  %v178_v15 = vld [vmem:[%s641_s1 + $0x18] sm:$0xff] }
   0xc   : > { %s468_s14 = sshll.u32 %s645_s13, 5  ;;  %v347_v13 = vld [vmem:[%s642_s2 + $0x10] sm:$0xff]  ;;  %514 = vset.pattern.permute.xlu0 %v526_v14  ;;  %515 = vset.pattern.permute.xlu1 %v526_v14  ;;  %v345_v16 = vld [vmem:[%s642_s2] sm:$0xff]  ;;  %v447_v19 = vld [vmem:[%s641_s1 + $0x28] sm:$0xff]  ;;  %vm377_vm1 = vcmask 130048  }
   0xd   : > { %s165_s17 = scalar_lea.vmem %s640_s0, %s468_s14  ;;  %513 = vset.pattern.permute.xlu2 %v526_v14  ;;  %v446_v18 = vld [vmem:[%s641_s1 + $0x20] sm:$0xff]  ;;  %v348_v23 = vld [vmem:[%s642_s2 + $0x18] sm:$0xff]  ;;  %v346_v26 = vld [vmem:[%s642_s2 + $0x8] sm:$0xff]  ;;  %s170_s30 = scalar_lea.vmem %s643_s3, %s468_s14 }
   0xe   : > { %v173_v0 = vld [vmem:[%s165_s17 + $0x10] sm:$0xff]  ;;  %v174_v1 = vld [vmem:[%s165_s17 + $0x18] sm:$0xff]  ;;  %v563_v2 = vld [vmem:[%s165_s17] sm:$0xff]  ;;  %351 = vperm.xlu2 %513, %v345_v16  }
   0xf   : > { %v493_v3 = vpack.i.bf16 %v173_v0, %v174_v1  ;;  %v172_v4 = vld [vmem:[%s165_s17 + $0x8] sm:$0xff]  ;;  %474 = vmatpush.msra.mxu1 %v174_v1  ;;  %v175_v29 = vld [vmem:[%s641_s1] sm:$0xff]  ;;  %v448_v30 = vld [vmem:[%s641_s1 + $0x30] sm:$0xff] }
  0x10   : > { %v503_v5 = vpack.i.bf16 %v563_v2, %v172_v4  ;;  %v459_v28 = vld [vmem:[%s641_s1 + $0x48] sm:$0xff]  ;;  %v460_v31 = vld [vmem:[%s641_s1 + $0x50] sm:$0xff]  ;;  %v458_v32 = vld [vmem:[%s641_s1 + $0x40] sm:$0xff] }
  0x11   : > { %494 = vrot.lane.b32.xlu0 %v493_v3, %s524_s18  ;;  %475 = vmatpush.msra.mxu1 %v173_v0  ;;  %v449_v33 = vld [vmem:[%s641_s1 + $0x38] sm:$0xff] }
  0x12   : > { %504 = vrot.lane.b32.xlu1 %v503_v5, %s524_s18  ;;  %v461_v34 = vld [vmem:[%s641_s1 + $0x58] sm:$0xff] }
  0x13   : > { %476 = vmatpush.msra.mxu1 %v172_v4 }
  0x15   : > { %477 = vmatpush.msra.mxu1 %v563_v2 }
  0x16   : > { %455 = vmatmul.msk.f32.vlgmr.msra.gmra.mxu1 %vm200_vm0, %v176_v6  ;;  %356 = vperm.xlu2 %513, %v346_v26  }
  0x19   : > { %499 = vrot.lane.b32.xlu0 %v493_v3, %s525_s19 }
  0x1a   : > { %509 = vrot.lane.b32.xlu1 %v503_v5, %s525_s19 }
  0x1e   : > { %456 = vmatmul.msk.f32.gmra.mxu1 %vm200_vm0, %v177_v7 }
  0x21   : > { %361 = vperm.xlu0 %514, %v347_v13  }
  0x22   : > { %366 = vperm.xlu1 %515, %v348_v23  }
  0x26   : > { %457 = vmatmul.msk.f32.gmra.mxu1 %vm200_vm0, %v178_v15 }
  0x68   : > { %v352_v36 = vpop.permute.xlu2 %351 }
  0x70   : > { %v357_v41 = vpop.permute.xlu2 %356 }
  0x83   : > { %v495_v8 = vpop.permute.xlu0 %494 }
  0x84   : > { %v496_v9 = vunpack.i.l.bf16 %v495_v8  ;;  %v505_v10 = vpop.permute.xlu1 %504  ;;  %v497_v11 = vunpack.i.h.bf16 %v495_v8 }
  0x85   : > { %v506_v12 = vunpack.i.l.bf16 %v505_v10  ;;  %v507_v17 = vunpack.i.h.bf16 %v505_v10 }
  0x86   : > { %225 = vmatpush.msra.mxu0 %v496_v9  ;;  %470 = vmatpush.msra.mxu3 %v496_v9 }
  0x88   : > { %226 = vmatpush.msra.mxu0 %v497_v11  ;;  %471 = vmatpush.msra.mxu3 %v497_v11 }
  0x8a   : > { %227 = vmatpush.msra.mxu0 %v506_v12  ;;  %472 = vmatpush.msra.mxu3 %v506_v12 }
  0x8b   : > { %v500_v20 = vpop.permute.xlu0 %499 }
  0x8c   : > { %228 = vmatpush.msra.mxu0 %v507_v17  ;;  %473 = vmatpush.msra.mxu3 %v507_v17  ;;  %v501_v21 = vunpack.i.l.bf16 %v500_v20  ;;  %v510_v22 = vpop.permute.xlu1 %509  ;;  %v502_v24 = vunpack.i.h.bf16 %v500_v20 }
  0x8d   : > { %450 = vmatmul.msk.f32.vlgmr.msra.gmra.mxu0 %vm200_vm0, %v446_v18  ;;  %451 = vmatmul.msk.f32.vlgmr.msra.gmra.mxu3 %vm200_vm0, %v447_v19  ;;  %v511_v25 = vunpack.i.l.bf16 %v510_v22  ;;  %v512_v27 = vunpack.i.h.bf16 %v510_v22 }
  0x8e   : > { %266 = vmatpush.msrb.mxu0 %v174_v1  ;;  %478 = vmatpush.msra.mxu2 %v501_v21 }
  0x90   : > { %267 = vmatpush.msrb.mxu0 %v173_v0  ;;  %479 = vmatpush.msra.mxu2 %v502_v24 }
  0x92   : > { %268 = vmatpush.msrb.mxu0 %v172_v4  ;;  %480 = vmatpush.msra.mxu2 %v511_v25 }
  0x93   : > { %v274_v37 = vpop.f32.mrf.mxu1  ;;  %v362_v55 = vpop.permute.xlu0 %361 }
  0x94   : > { %269 = vmatpush.msrb.mxu0 %v563_v2  ;;  %481 = vmatpush.msra.mxu2 %v512_v27  ;;  %v367_v63 = vpop.permute.xlu1 %366 }
  0x95   : > { %463 = vmatmul.msk.f32.vlgmr.msra.gmra.mxu2 %vm200_vm0, %v459_v28  ;;  %454 = vmatmul.msk.f32.vlgmr.msrb.gmra.mxu0 %vm200_vm0, %v175_v29 }
  0x96   : > { %324 = vmatpush.msra.mxu0 %v501_v21  ;;  %452 = vmatmul.msk.f32.gmra.mxu3 %vm200_vm0, %v448_v30 }
  0x98   : > { %325 = vmatpush.msra.mxu0 %v502_v24 }
  0x9a   : > { %326 = vmatpush.msra.mxu0 %v511_v25 }
  0x9b   : > { %v277_v44 = vpop.f32.mrf.mxu1 }
  0x9c   : > { %327 = vmatpush.msra.mxu0 %v512_v27 }
  0x9d   : > { %464 = vmatmul.msk.f32.gmra.mxu2 %vm200_vm0, %v460_v31  ;;  %462 = vmatmul.msk.f32.vlgmr.msra.gmra.mxu0 %vm200_vm0, %v458_v32 }
  0x9e   : > { %453 = vmatmul.msk.f32.gmra.mxu3 %vm200_vm0, %v449_v33 }
  0xa3   : > { %v280_v58 = vpop.f32.mrf.mxu1 }
  0xa5   : > { %465 = vmatmul.msk.f32.gmra.mxu2 %vm200_vm0, %v461_v34 }
 0x10a   : > { %v230_v35 = vpop.f32.mrf.mxu0 }
 0x110   : > { %v233_v38 = vpop.f32.mrf.mxu3 }
 0x111   : > { %v275_v40 = vadd.f32 %v274_v37, %v233_v38 }
 0x112   : > { %v271_v39 = vpop.f32.mrf.mxu0 }
 0x113   : > { %v272_v42 = vadd.f32 %v271_v39, %v230_v35 }
 0x118   : > { %v332_v43 = vpop.f32.mrf.mxu2 }
 0x119   : > { %v342_v45 = vadd.f32 %v332_v43, %v275_v40  ;;  %v236_v46 = vpop.f32.mrf.mxu3 }
 0x11a   : > { %v329_v48 = vpop.f32.mrf.mxu0  ;;  %v278_v51 = vadd.f32 %v277_v44, %v236_v46 }
 0x11b   : > { %v370_v47 = vadd.f32 %v357_v41, %v342_v45  ;;  %v341_v49 = vadd.f32 %v329_v48, %v272_v42 }
 0x11d   : > { %v374_v50 = vmax.f32 %v370_v47, 0.0  ;;  %v369_v52 = vadd.f32 %v352_v36, %v341_v49 }
 0x11f   : > { %379 = vst.msk [vmem:[%s170_s30 + $0x8] sm:$0xff] %vm377_vm1, %v374_v50  ;;  %v373_v53 = vmax.f32 %v369_v52, 0.0 }
 0x120   : > { %v335_v54 = vpop.f32.mrf.mxu2 }
 0x121   : > { %v343_v56 = vadd.f32 %v335_v54, %v278_v51  ;;  %378 = vst.msk [vmem:[%s170_s30] sm:$0xff] %vm377_vm1, %v373_v53  ;;  %v239_v57 = vpop.f32.mrf.mxu3 }
 0x122   : > { %v281_v61 = vadd.f32 %v280_v58, %v239_v57 }
 0x123   : > { %v371_v59 = vadd.f32 %v362_v55, %v343_v56 }
 0x125   : > { %v375_v60 = vmax.f32 %v371_v59, 0.0 }
 0x127   : > { %380 = vst.msk [vmem:[%s170_s30 + $0x10] sm:$0xff] %vm377_vm1, %v375_v60 }
 0x128   : > { %v338_v62 = vpop.f32.mrf.mxu2 }
 0x129   : > { %v344_v0 = vadd.f32 %v338_v62, %v281_v61 }
 0x12b   : > { %v372_v1 = vadd.f32 %v367_v63, %v344_v0 }
 0x12d   : > { %v376_v2 = vmax.f32 %v372_v1, 0.0 }
 0x12f   : > { %381 = vst.msk [vmem:[%s170_s30 + $0x18] sm:$0xff] %vm377_vm1, %v376_v2 }
 0x130 PF: > { %s13_s12 = sadd.s32 1, %s522_s12  }
 0x131   : > { %p10_p4 = scmp.ge.s32.totalorder %s13_s12, 4  }
 0x133   :  { %12 = sbr.rel (!%p10_p4) target bundleno = 1 (0x1), region = 64 }

// kernel: rnn_forward.13
= control target key start
LH: loop header
LB: loop body
LE: loop exit
PB: predicated region body
PF: predicated region fallthrough
CT: control target
= control target key end

     0   :  { %s137_s0 = inlined_call_operand.vmem [shape: f32[2,32], index: 0, kind: input, shape index: {}]   ;;  %s138_s1 = inlined_call_operand.vmem [shape: f32[32,12], index: 1, kind: input, shape index: {}]   ;;  %s139_s2 = inlined_call_operand.vmem [shape: f32[1,12], index: 2, kind: input, shape index: {}]   ;;  %s140_s3 = inlined_call_operand.hbm [shape: f32[2,12], index: 3, kind: output, shape index: {}]  }
   0x1   :  { %v19_v0 = vld [vmem:[%s138_s1 + $0x18] sm:$0xff]  ;;  %v18_v1 = vld [vmem:[%s138_s1 + $0x10] sm:$0xff]  ;;  %v17_v2 = vld [vmem:[%s138_s1 + $0x8] sm:$0xff] }
   0x2   :  { %40 = vmatpush.msra.mxu0 %v19_v0 }
   0x3   :  { %8 = vsyncpa [#allocation3], 0  ;;  %v16_v3 = vld [vmem:[%s138_s1] sm:$0xff]  ;;  %vm24_vm0 = vcmask 261120   ;;  %s95_s24 = smov [#allocation2]   ;;  %s57_s28 = sshll.u32 %s140_s3, 4  ;;  %s58_s28 = int_to_ptr.hbm [resolvable:$true] %s57_s28 }
   0x4   :  { %41 = vmatpush.msra.mxu0 %v18_v1  ;;  %v15_v4 = vld [vmem:[%s137_s0] sm:$0x3]  ;;  %s55_s25 = sshll.u32 %s95_s24, 4  ;;  %vm48_vm1 = vcmask 91136   ;;  %s56_s25 = int_to_ptr.vmem [resolvable:$true] %s55_s25 }
   0x5   :  { %v68_v5 = vld [vmem:[%s139_s2] ss:$0 sm:$0xff] }
   0x6   :  { %42 = vmatpush.msra.mxu0 %v17_v2 }
   0x8   :  { %43 = vmatpush.msra.mxu0 %v16_v3 }
   0x9   :  { %66 = vmatmul.msk.f32.vlgmr.msra.gmra.mxu0 %vm24_vm0, %v15_v4 }
  0x86   :  { %v45_v6 = vpop.f32.mrf.mxu0 }
  0x87   :  { %v46_v7 = vadd.f32 %v68_v5, %v45_v6 }
  0x89   :  { %49 = vst.msk [vmem:[#allocation2] sm:$0x3] %vm48_vm1, %v46_v7 }
  0x8a   :  { %60 = dma.vmem_to_hbm [thread:$0]  %s56_s25, 32, %s58_s28, [#allocation3]  }
  0x8b   :  { %93 = dma.done.wait [#allocation3], 32  }
  0x8c   :  { %94 = vsyncadd [#allocation3], 4294967264 }
  0x8d   :  { %65 = vsyncpa [#allocation3], 1 }

// kernel: rnn_forward.11
= control target key start
LH: loop header
LB: loop body
LE: loop exit
PB: predicated region body
PF: predicated region fallthrough
CT: control target
= control target key end

     0   :  { %s626_s15 = smov 0   ;;  %s726_s0 = inlined_call_operand.vmem [shape: f32[2,32,20], index: 0, kind: input, shape index: {}]   ;;  %s727_s1 = inlined_call_operand.vmem [shape: f32[3,32,32], index: 1, kind: input, shape index: {}]   ;;  %s728_s2 = inlined_call_operand.vmem [shape: f32[32,1], index: 2, kind: input, shape index: {}]   ;;  %s729_s3 = inlined_call_operand.vmem [shape: f32[2,32,16], index: 3, kind: input, shape index: {}]   ;;  %s730_s4 = inlined_call_operand.vmem [shape: f32[2,32,16], index: 4, kind: output, shape index: {}]  }
   0x1 LB: > { %s508_s16 = sadd.s32 4294967295, %s596_s15   ;;  %p512_p0 = scmp.ge.s32.totalorder %s596_s15, 1  ;;  %s596_s15 = sphi %s626_s15, %s14_s15  }
   0x2   : > { %p172_p1 = scmp.lt.s32.totalorder %s596_s15, 3 }
   0x4   : > { %p173_p2 = pnand %p512_p0, %p172_p1 }
   0x5   : > { %p203_p3 = scmp.lt.s32.totalorder (!%p173_p2), %s508_s16, 1  ;;  %s598_s21 = smov (!%p173_p2), 126  }
   0x6   : > { %176 = sbr.rel (%p173_p2) target bundleno = 308 (0x134), region = 36  ;;  %s599_s22 = smov (!%p173_p2), 124  }
   0xb   : > { %s732_s16 = smov (!%p203_p3, %s508_s16), 1  ;;  %vm247_vm0 = vcmask 261120   ;;  %v223_v6 = vld [vmem:[%s727_s1 + $0x8] sm:$0xff]  ;;  %v224_v7 = vld [vmem:[%s727_s1 + $0x10] sm:$0xff]  ;;  %v600_v14 = vmov 0   ;;  %v225_v15 = vld [vmem:[%s727_s1 + $0x18] sm:$0xff] }
   0xc   : > { %s634_s17 = sshll.u32 %s732_s16, 5  ;;  %v394_v13 = vld [vmem:[%s728_s2 + $0x10] sm:$0xff]  ;;  %588 = vset.pattern.permute.xlu0 %v600_v14  ;;  %589 = vset.pattern.permute.xlu1 %v600_v14  ;;  %v392_v16 = vld [vmem:[%s728_s2] sm:$0xff]  ;;  %v520_v19 = vld [vmem:[%s727_s1 + $0x28] sm:$0xff]  ;;  %vm436_vm1 = vcmask 130048  }
   0xd   : > { %s207_s20 = scalar_lea.vmem %s726_s0, %s634_s17  ;;  %587 = vset.pattern.permute.xlu2 %v600_v14  ;;  %v519_v18 = vld [vmem:[%s727_s1 + $0x20] sm:$0xff]  ;;  %v395_v23 = vld [vmem:[%s728_s2 + $0x18] sm:$0xff]  ;;  %v393_v26 = vld [vmem:[%s728_s2 + $0x8] sm:$0xff]  ;;  %s709_s7 = scalar_lea.vmem %s729_s3, %s634_s17 }
   0xe   : > { %v220_v0 = vld [vmem:[%s207_s20 + $0x10] sm:$0xff]  ;;  %v221_v1 = vld [vmem:[%s207_s20 + $0x18] sm:$0xff]  ;;  %v640_v2 = vld [vmem:[%s207_s20] sm:$0xff]  ;;  %398 = vperm.xlu2 %587, %v392_v16   ;;  %s217_s10 = scalar_lea.vmem %s730_s4, %s634_s17 }
   0xf   : > { %v567_v3 = vpack.i.bf16 %v220_v0, %v221_v1  ;;  %v219_v4 = vld [vmem:[%s207_s20 + $0x8] sm:$0xff]  ;;  %548 = vmatpush.msra.mxu1 %v221_v1  ;;  %v222_v29 = vld [vmem:[%s727_s1] sm:$0xff]  ;;  %v521_v30 = vld [vmem:[%s727_s1 + $0x30] sm:$0xff] }
  0x10   : > { %v577_v5 = vpack.i.bf16 %v640_v2, %v219_v4  ;;  %v532_v28 = vld [vmem:[%s727_s1 + $0x48] sm:$0xff]  ;;  %v533_v31 = vld [vmem:[%s727_s1 + $0x50] sm:$0xff]  ;;  %v531_v32 = vld [vmem:[%s727_s1 + $0x40] sm:$0xff] }
  0x11   : > { %568 = vrot.lane.b32.xlu0 %v567_v3, %s598_s21  ;;  %549 = vmatpush.msra.mxu1 %v220_v0  ;;  %v522_v33 = vld [vmem:[%s727_s1 + $0x38] sm:$0xff]  ;;  %v425_v49 = vld [vmem:[%s709_s7 + $0x8] sm:$0xff]  ;;  %v424_v55 = vld [vmem:[%s709_s7] sm:$0xff] }
  0x12   : > { %578 = vrot.lane.b32.xlu1 %v577_v5, %s598_s21  ;;  %v534_v34 = vld [vmem:[%s727_s1 + $0x58] sm:$0xff] }
  0x13   : > { %550 = vmatpush.msra.mxu1 %v219_v4 }
  0x15   : > { %551 = vmatpush.msra.mxu1 %v640_v2 }
  0x16   : > { %528 = vmatmul.msk.f32.vlgmr.msra.gmra.mxu1 %vm247_vm0, %v223_v6  ;;  %403 = vperm.xlu2 %587, %v393_v26  }
  0x19   : > { %573 = vrot.lane.b32.xlu0 %v567_v3, %s599_s22 }
  0x1a   : > { %583 = vrot.lane.b32.xlu1 %v577_v5, %s599_s22 }
  0x1e   : > { %529 = vmatmul.msk.f32.gmra.mxu1 %vm247_vm0, %v224_v7 }
  0x21   : > { %408 = vperm.xlu0 %588, %v394_v13  }
  0x22   : > { %413 = vperm.xlu1 %589, %v395_v23  }
  0x26   : > { %530 = vmatmul.msk.f32.gmra.mxu1 %vm247_vm0, %v225_v15 }
  0x68   : > { %v399_v36 = vpop.permute.xlu2 %398 }
  0x70   : > { %v404_v41 = vpop.permute.xlu2 %403 }
  0x83   : > { %v569_v8 = vpop.permute.xlu0 %568 }
  0x84   : > { %v570_v9 = vunpack.i.l.bf16 %v569_v8  ;;  %v579_v10 = vpop.permute.xlu1 %578  ;;  %v571_v11 = vunpack.i.h.bf16 %v569_v8 }
  0x85   : > { %v580_v12 = vunpack.i.l.bf16 %v579_v10  ;;  %v581_v17 = vunpack.i.h.bf16 %v579_v10 }
  0x86   : > { %272 = vmatpush.msra.mxu0 %v570_v9  ;;  %544 = vmatpush.msra.mxu3 %v570_v9 }
  0x88   : > { %273 = vmatpush.msra.mxu0 %v571_v11  ;;  %545 = vmatpush.msra.mxu3 %v571_v11  ;;  %v427_v11 = vld [vmem:[%s709_s7 + $0x18] sm:$0xff] }
  0x8a   : > { %274 = vmatpush.msra.mxu0 %v580_v12  ;;  %546 = vmatpush.msra.mxu3 %v580_v12 }
  0x8b   : > { %v574_v20 = vpop.permute.xlu0 %573 }
  0x8c   : > { %275 = vmatpush.msra.mxu0 %v581_v17  ;;  %547 = vmatpush.msra.mxu3 %v581_v17  ;;  %v575_v21 = vunpack.i.l.bf16 %v574_v20  ;;  %v584_v22 = vpop.permute.xlu1 %583  ;;  %v576_v24 = vunpack.i.h.bf16 %v574_v20 }
  0x8d   : > { %523 = vmatmul.msk.f32.vlgmr.msra.gmra.mxu0 %vm247_vm0, %v519_v18  ;;  %524 = vmatmul.msk.f32.vlgmr.msra.gmra.mxu3 %vm247_vm0, %v520_v19  ;;  %v585_v25 = vunpack.i.l.bf16 %v584_v22  ;;  %v586_v27 = vunpack.i.h.bf16 %v584_v22 }
  0x8e   : > { %313 = vmatpush.msrb.mxu0 %v221_v1  ;;  %552 = vmatpush.msra.mxu2 %v575_v21 }
  0x90   : > { %314 = vmatpush.msrb.mxu0 %v220_v0  ;;  %553 = vmatpush.msra.mxu2 %v576_v24 }
  0x92   : > { %315 = vmatpush.msrb.mxu0 %v219_v4  ;;  %554 = vmatpush.msra.mxu2 %v585_v25 }
  0x93   : > { %v321_v37 = vpop.f32.mrf.mxu1  ;;  %v409_v58 = vpop.permute.xlu0 %408 }
  0x94   : > { %316 = vmatpush.msrb.mxu0 %v640_v2  ;;  %555 = vmatpush.msra.mxu2 %v586_v27  ;;  %v426_v2 = vld [vmem:[%s709_s7 + $0x10] sm:$0xff]  ;;  %v414_v7 = vpop.permute.xlu1 %413 }
  0x95   : > { %536 = vmatmul.msk.f32.vlgmr.msra.gmra.mxu2 %vm247_vm0, %v532_v28  ;;  %527 = vmatmul.msk.f32.vlgmr.msrb.gmra.mxu0 %vm247_vm0, %v222_v29 }
  0x96   : > { %371 = vmatpush.msra.mxu0 %v575_v21  ;;  %525 = vmatmul.msk.f32.gmra.mxu3 %vm247_vm0, %v521_v30 }
  0x98   : > { %372 = vmatpush.msra.mxu0 %v576_v24 }
  0x9a   : > { %373 = vmatpush.msra.mxu0 %v585_v25 }
  0x9b   : > { %v324_v44 = vpop.f32.mrf.mxu1 }
  0x9c   : > { %374 = vmatpush.msra.mxu0 %v586_v27 }
  0x9d   : > { %537 = vmatmul.msk.f32.gmra.mxu2 %vm247_vm0, %v533_v31  ;;  %535 = vmatmul.msk.f32.vlgmr.msra.gmra.mxu0 %vm247_vm0, %v531_v32 }
  0x9e   : > { %526 = vmatmul.msk.f32.gmra.mxu3 %vm247_vm0, %v522_v33 }
  0xa3   : > { %v327_v63 = vpop.f32.mrf.mxu1 }
  0xa5   : > { %538 = vmatmul.msk.f32.gmra.mxu2 %vm247_vm0, %v534_v34 }
 0x10a   : > { %v277_v35 = vpop.f32.mrf.mxu0 }
 0x110   : > { %v280_v38 = vpop.f32.mrf.mxu3 }
 0x111   : > { %v322_v40 = vadd.f32 %v321_v37, %v280_v38 }
 0x112   : > { %v318_v39 = vpop.f32.mrf.mxu0 }
 0x113   : > { %v319_v42 = vadd.f32 %v318_v39, %v277_v35 }
 0x118   : > { %v379_v43 = vpop.f32.mrf.mxu2 }
 0x119   : > { %v389_v45 = vadd.f32 %v379_v43, %v322_v40  ;;  %v283_v46 = vpop.f32.mrf.mxu3 }
 0x11a   : > { %v376_v48 = vpop.f32.mrf.mxu0  ;;  %v325_v52 = vadd.f32 %v324_v44, %v283_v46 }
 0x11b   : > { %v417_v47 = vadd.f32 %v404_v41, %v389_v45  ;;  %v388_v50 = vadd.f32 %v376_v48, %v319_v42 }
 0x11d   : > { %v421_v51 = vmax.f32 %v417_v47, 0.0  ;;  %v416_v53 = vadd.f32 %v399_v36, %v388_v50 }
 0x11f   : > { %v429_v54 = vadd.f32 %v425_v49, %v421_v51  ;;  %v420_v56 = vmax.f32 %v416_v53, 0.0 }
 0x120   : > { %v382_v57 = vpop.f32.mrf.mxu2 }
 0x121   : > { %v433_v59 = vmax.f32 %v429_v54, 0.0  ;;  %v390_v60 = vadd.f32 %v382_v57, %v325_v52  ;;  %v428_v61 = vadd.f32 %v424_v55, %v420_v56  ;;  %v286_v62 = vpop.f32.mrf.mxu3 }
 0x122   : > { %v328_v4 = vadd.f32 %v327_v63, %v286_v62 }
 0x123   : > { %438 = vst.msk [vmem:[%s217_s10 + $0x8] sm:$0xff] %vm436_vm1, %v433_v59  ;;  %v418_v0 = vadd.f32 %v409_v58, %v390_v60  ;;  %v432_v1 = vmax.f32 %v428_v61, 0.0 }
 0x125   : > { %v422_v3 = vmax.f32 %v418_v0, 0.0  ;;  %437 = vst.msk [vmem:[%s217_s10] sm:$0xff] %vm436_vm1, %v432_v1 }
 0x127   : > { %v430_v5 = vadd.f32 %v426_v2, %v422_v3 }
 0x128   : > { %v385_v6 = vpop.f32.mrf.mxu2 }
 0x129   : > { %v434_v8 = vmax.f32 %v430_v5, 0.0  ;;  %v391_v9 = vadd.f32 %v385_v6, %v328_v4 }
 0x12b   : > { %439 = vst.msk [vmem:[%s217_s10 + $0x10] sm:$0xff] %vm436_vm1, %v434_v8  ;;  %v419_v10 = vadd.f32 %v414_v7, %v391_v9 }
 0x12d   : > { %v423_v12 = vmax.f32 %v419_v10, 0.0 }
 0x12f   : > { %v431_v13 = vadd.f32 %v427_v11, %v423_v12 }
 0x131   : > { %v435_v14 = vmax.f32 %v431_v13, 0.0 }
 0x133   : > { %440 = vst.msk [vmem:[%s217_s10 + $0x18] sm:$0xff] %vm436_vm1, %v435_v14 }
 0x134 PF: > { %s14_s15 = sadd.s32 1, %s596_s15  }
 0x135   : > { %p11_p4 = scmp.ge.s32.totalorder %s14_s15, 4  }
 0x137   :  { %13 = sbr.rel (!%p11_p4) target bundleno = 1 (0x1), region = 71 }

// kernel: rnn_forward.12
= control target key start
LH: loop header
LB: loop body
LE: loop exit
PB: predicated region body
PF: predicated region fallthrough
CT: control target
= control target key end

     0   :  { %s137_s0 = inlined_call_operand.vmem [shape: f32[2,32], index: 0, kind: input, shape index: {}]   ;;  %s138_s1 = inlined_call_operand.vmem [shape: f32[32,60], index: 1, kind: input, shape index: {}]   ;;  %s139_s2 = inlined_call_operand.vmem [shape: f32[1,60], index: 2, kind: input, shape index: {}]   ;;  %s140_s3 = inlined_call_operand.hbm [shape: f32[2,60], index: 3, kind: output, shape index: {}]  }
   0x1   :  { %v19_v0 = vld [vmem:[%s138_s1 + $0x18] sm:$0xff]  ;;  %v18_v1 = vld [vmem:[%s138_s1 + $0x10] sm:$0xff]  ;;  %v17_v2 = vld [vmem:[%s138_s1 + $0x8] sm:$0xff] }
   0x2   :  { %40 = vmatpush.msra.mxu0 %v19_v0 }
   0x3   :  { %8 = vsyncpa [#allocation3], 0  ;;  %v16_v3 = vld [vmem:[%s138_s1] sm:$0xff]  ;;  %vm24_vm0 = vcmask 261120   ;;  %s95_s24 = smov [#allocation2]   ;;  %s57_s28 = sshll.u32 %s140_s3, 4  ;;  %s58_s28 = int_to_ptr.hbm [resolvable:$true] %s57_s28 }
   0x4   :  { %41 = vmatpush.msra.mxu0 %v18_v1  ;;  %v15_v4 = vld [vmem:[%s137_s0] sm:$0x3]  ;;  %s55_s25 = sshll.u32 %s95_s24, 4  ;;  %vm48_vm1 = vcmask 484352   ;;  %s56_s25 = int_to_ptr.vmem [resolvable:$true] %s55_s25 }
   0x5   :  { %v68_v5 = vld [vmem:[%s139_s2] ss:$0 sm:$0xff] }
   0x6   :  { %42 = vmatpush.msra.mxu0 %v17_v2 }
   0x8   :  { %43 = vmatpush.msra.mxu0 %v16_v3 }
   0x9   :  { %66 = vmatmul.msk.f32.vlgmr.msra.gmra.mxu0 %vm24_vm0, %v15_v4 }
  0x86   :  { %v45_v6 = vpop.f32.mrf.mxu0 }
  0x87   :  { %v46_v7 = vadd.f32 %v68_v5, %v45_v6 }
  0x89   :  { %49 = vst.msk [vmem:[#allocation2] sm:$0x3] %vm48_vm1, %v46_v7 }
  0x8a   :  { %60 = dma.vmem_to_hbm [thread:$0]  %s56_s25, 32, %s58_s28, [#allocation3]  }
  0x8b   :  { %93 = dma.done.wait [#allocation3], 32  }
  0x8c   :  { %94 = vsyncadd [#allocation3], 4294967264 }
  0x8d   :  { %65 = vsyncpa [#allocation3], 1 }

</bundles_post_ra>
